<compile_context>
chip_gen: v7x
topology: tpu7x:2x2x1
jax: 0.10.0
libtpu: 0.0.40
codegen_flags: <defaults>
</compile_context>

<pallas_src>
import functools

import jax
import jax.numpy as jnp
from jax.experimental import pallas as pl
from jax.experimental.pallas import tpu as pltpu


# ----------------------------------------------------------------------------- kernels

def _cbhg_front_kernel(xpad_ref, wbank_ref, sbank_ref, tbank_ref,
                       wp1_ref, sp1_ref, tp1_ref,
                       wp2_ref, sp2_ref, tp2_ref,
                       hw0w_ref, hw0b_ref, hwpw_ref, hwpb_ref, hwgw_ref, hwgb_ref,
                       o_ref, p1pad_sc, p2pad_sc, *, mm_dtype):
    """conv bank + BN + ReLU + maxpool + conv projections + BN + residual + highway."""
    B = xpad_ref.shape[0]
    idim = xpad_ref.shape[2]
    T = o_ref.shape[1]
    Hu = hw0w_ref.shape[1]
    L = wbank_ref.shape[0]
    PL = (L - 1) // 2                      # left pad of the shared padded input
    Cb_all = wbank_ref.shape[2]
    Cp = wp1_ref.shape[2]
    Kp = wp1_ref.shape[0]
    Pp = (Kp - 1) // 2
    Lh = hwpw_ref.shape[0]

    def mm(a, b):
        return jnp.dot(a.astype(mm_dtype), b.astype(mm_dtype),
                       preferred_element_type=jnp.float32)

    def conv1d(src_ref, w_ref, ntaps, cin):
        # 1-D conv as a sum of shifted 2-D (B*T, cin) @ (cin, cout) matmuls.
        acc = mm(src_ref[:, 0:T, :].reshape(B * T, cin), w_ref[0])
        for j in range(1, ntaps):
            acc = acc + mm(src_ref[:, j:j + T, :].reshape(B * T, cin), w_ref[j])
        return acc

    # ---- conv bank: all L kernel sizes fused into one packed, lane-dense weight
    conv = jnp.maximum(
        conv1d(xpad_ref, wbank_ref, L, idim) * sbank_ref[...] + tbank_ref[...], 0.0)

    # ---- maxpool(k=2, s=1, right zero pad), computed inside the proj-1 padding scratch
    zb = jnp.zeros((B, Pp, Cb_all), jnp.float32)
    p1pad_sc[:, Pp:Pp + T, :] = conv.reshape(B, T, Cb_all)
    p1pad_sc[:, Pp + T:T + 2 * Pp, :] = zb
    pooled = jnp.maximum(p1pad_sc[:, Pp:Pp + T, :], p1pad_sc[:, Pp + 1:Pp + T + 1, :])
    p1pad_sc[:, Pp:Pp + T, :] = pooled
    p1pad_sc[:, 0:Pp, :] = zb

    # ---- projection conv 1 + BN + ReLU
    p1 = jnp.maximum(
        conv1d(p1pad_sc, wp1_ref, Kp, Cb_all) * sp1_ref[...] + tp1_ref[...], 0.0)

    # ---- projection conv 2 + BN (no ReLU)
    zp = jnp.zeros((B, Pp, Cp), jnp.float32)
    p2pad_sc[:, 0:Pp, :] = zp
    p2pad_sc[:, Pp:Pp + T, :] = p1.reshape(B, T, Cp)
    p2pad_sc[:, Pp + T:T + 2 * Pp, :] = zp
    p2 = conv1d(p2pad_sc, wp2_ref, Kp, Cp) * sp2_ref[...] + tp2_ref[...]

    # ---- residual + input Linear + highway stack (2-D (B*T, .) layout throughout)
    x0 = xpad_ref[:, PL:PL + T, :].reshape(B * T, idim)
    h = mm(x0 + p2, hw0w_ref[...]) + hw0b_ref[...]
    for l in range(Lh):
        p = jnp.maximum(mm(h, hwpw_ref[l]) + hwpb_ref[l], 0.0)
        g = jax.nn.sigmoid(mm(h, hwgw_ref[l]) + hwgb_ref[l])
        h = h + g * (p - h)                     # == p * g + h * (1 - g)
    o_ref[...] = h.reshape(B, T, Hu)


def _bigru_out_kernel(x_ref, m_ref, wi_ref, bi_ref, whf_ref, whb_ref,
                      bhnf_ref, bhnb_ref, wof_ref, wob_ref, bo_ref,
                      o_ref, gi_sc, yf_sc, yb_sc, hf_sc, hb_sc, *, mm_dtype):
    """Masked BiGRU (PyTorch gate order [r, z, n]) with fused output Linear."""
    B, T, Hu = x_ref.shape
    H = whf_ref.shape[1]
    odim = wof_ref.shape[1]

    def mm(a, b):
        return jnp.dot(a.astype(mm_dtype), b.astype(mm_dtype),
                       preferred_element_type=jnp.float32)

    # ---- hoisted input projection: one matmul for both directions and all three gates
    gi = mm(x_ref[...].reshape(B * T, Hu), wi_ref[...]) + bi_ref[...]     # (B*T, 6H)
    for g in range(6):            # split per gate ONCE, outside the serial recurrence
        gi_sc[g] = gi[:, g * H:(g + 1) * H].reshape(B, T, H)
    gif_r, gif_z, gif_n = gi_sc.at[0], gi_sc.at[1], gi_sc.at[2]
    gib_r, gib_z, gib_n = gi_sc.at[3], gi_sc.at[4], gi_sc.at[5]

    # hoisted recurrent weights / biases (per-gate (H, H) -> no per-step lane slicing)
    whf_r, whf_z, whf_n = whf_ref[0], whf_ref[1], whf_ref[2]
    whb_r, whb_z, whb_n = whb_ref[0], whb_ref[1], whb_ref[2]
    bhn_f = bhnf_ref[...]
    bhn_b = bhnb_ref[...]

    hf_sc[...] = jnp.zeros((B, H), jnp.float32)
    hb_sc[...] = jnp.zeros((B, H), jnp.float32)

    def load_t(ref, t):
        return ref[:, pl.ds(t, 1), :][:, 0, :]          # (B, H)

    def gru_step(h, g_r, g_z, g_n, w_r, w_z, w_n, b_n):
        # b_ir+b_hr and b_iz+b_hz are folded into gi; b_hn must stay inside r*(.).
        r = jax.nn.sigmoid(g_r + mm(h, w_r))
        z = jax.nn.sigmoid(g_z + mm(h, w_z))
        n = jnp.tanh(g_n + r * (mm(h, w_n) + b_n))
        return n + z * (h - n)                          # == (1 - z) * n + z * h

    @pl.loop(0, T)
    def _(t):
        tb = T - 1 - t
        # ---- forward direction, time t
        mf = load_t(m_ref, t)
        hfp = hf_sc[...]
        hfn = gru_step(hfp, load_t(gif_r, t), load_t(gif_z, t), load_t(gif_n, t),
                       whf_r, whf_z, whf_n, bhn_f)
        hf = hfp + mf * (hfn - hfp)
        hf_sc[...] = hf
        yf_sc[:, pl.ds(t, 1), :] = (mf * hf)[:, None, :]
        # ---- backward direction, time tb (independent; interleaves with the fwd step)
        mb = load_t(m_ref, tb)
        hbp = hb_sc[...]
        hbn = gru_step(hbp, load_t(gib_r, tb), load_t(gib_z, tb), load_t(gib_n, tb),
                       whb_r, whb_z, whb_n, bhn_b)
        hb = hbp + mb * (hbn - hbp)
        hb_sc[...] = hb
        yb_sc[:, pl.ds(tb, 1), :] = (mb * hb)[:, None, :]

    # ---- fused output Linear; single dense store of (B, T, odim)
    y = (mm(yf_sc[...].reshape(B * T, H), wof_ref[...])
         + mm(yb_sc[...].reshape(B * T, H), wob_ref[...]))
    o_ref[...] = y.reshape(B, T, odim) + bo_ref[...]


# ----------------------------------------------------------------------------- helpers

def _full_specs(arrays):
    """Full-array (single-block) BlockSpecs for a grid of (1,)."""
    specs = []
    for a in arrays:
        specs.append(pl.BlockSpec(a.shape, lambda i, _nd=a.ndim: (0,) * _nd))
    return specs


# ----------------------------------------------------------------------------- module

class CBHGPallas:
    """CBHG forward pass as two fused Pallas TPU kernels (deterministic synthetic params)."""

    def __init__(self, key, idim, odim, conv_bank_layers=4, conv_bank_chans=16,
                 conv_proj_filts=3, conv_proj_chans=32, highway_layers=2,
                 highway_units=16, gru_units=32, mm_dtype=jnp.float32):
        assert gru_units % 2 == 0
        assert conv_proj_filts % 2 == 1 and conv_proj_filts >= 3
        self.idim, self.odim = idim, odim
        self.conv_bank_layers = conv_bank_layers
        self.conv_bank_chans = conv_bank_chans
        self.conv_proj_filts = conv_proj_filts
        self.conv_proj_chans = conv_proj_chans
        self.highway_layers = highway_layers
        self.highway_units = highway_units
        self.gru_units = gru_units
        self.H = gru_units // 2
        # mm_dtype=jnp.bfloat16 is recommended on v6e/v7x (full-rate MXU bf16);
        # keep f32 on v5e (no bf16 VPU/EUP) and for exact PyTorch-matching numerics.
        self.mm_dtype = mm_dtype

        self._key = key
        self._kidx = 0

        # ---- conv bank: pack all kernel sizes k=1..L into one (L, idim, L*Cb) weight so
        # the whole bank becomes L shifted matmuls on a single shared padded input.
        L, Cb = conv_bank_layers, conv_bank_chans
        self.PL = (L - 1) // 2                              # shared left pad
        wbank = jnp.zeros((L, idim, L * Cb), jnp.float32)
        sbank, tbank = [], []
        for k in range(1, L + 1):
            wk = self._rand((k, idim, Cb))
            off = self.PL - (k - 1) // 2                    # PL - pad_left(k)  (>= 0)
            wbank = wbank.at[off:off + k, :, (k - 1) * Cb:k * Cb].set(wk)
            s, t = self._make_bn_fold(Cb)
            sbank.append(s)
            tbank.append(t)
        self.wbank = wbank
        self.sbank = jnp.concatenate(sbank).reshape(1, L * Cb)
        self.tbank = jnp.concatenate(tbank).reshape(1, L * Cb)

        # ---- projections (conv k=3 + BN + ReLU, conv k=3 + BN)
        Kp = conv_proj_filts
        self.Pp = (Kp - 1) // 2
        cin = L * Cb
        self.wp1 = self._rand((Kp, cin, conv_proj_chans))
        s, t = self._make_bn_fold(conv_proj_chans)
        self.sp1, self.tp1 = s.reshape(1, -1), t.reshape(1, -1)
        self.wp2 = self._rand((Kp, conv_proj_chans, idim))
        s, t = self._make_bn_fold(idim)
        self.sp2, self.tp2 = s.reshape(1, -1), t.reshape(1, -1)

        # ---- highways (first layer is a plain Linear idim -> highway_units)
        Hu = highway_units
        self.hw0_w = self._rand((idim, Hu))
        self.hw0_b = self._rand((1, Hu))
        self.hwp_w = self._rand((highway_layers, Hu, Hu))
        self.hwp_b = self._rand((highway_layers, 1, Hu))
        self.hwg_w = self._rand((highway_layers, Hu, Hu))
        self.hwg_b = self._rand((highway_layers, 1, Hu))

        # ---- bidirectional GRU, per-gate layout (PyTorch gate order [r, z, n])
        H = self.H

        def gru_dir():
            wi = [self._rand((Hu, H)) for _ in range(3)]
            wh = [self._rand((H, H)) for _ in range(3)]
            bi = [self._rand((H,)) for _ in range(3)]
            bh = [self._rand((H,)) for _ in range(3)]
            return wi, wh, bi, bh

        wif, whf, bif, bhf = gru_dir()
        wib, whb, bib, bhb = gru_dir()
        # input projections of both directions fused into one (Hu, 6H) matmul; the r/z
        # hidden biases are folded in (the n hidden bias must stay inside r * (.)).
        self.wi_all = jnp.concatenate(wif + wib, axis=1)
        self.bi_all = jnp.concatenate(
            [bif[0] + bhf[0], bif[1] + bhf[1], bif[2],
             bib[0] + bhb[0], bib[1] + bhb[1], bib[2]]).reshape(1, 6 * H)
        self.whf3 = jnp.stack(whf)
        self.whb3 = jnp.stack(whb)
        self.bhn_f = bhf[2].reshape(1, H)
        self.bhn_b = bhb[2].reshape(1, H)

        # ---- output linear (gru_units -> odim), split into fwd/bwd halves
        wo = self._rand((gru_units, odim))
        self.wo_f = wo[:H]
        self.wo_b = wo[H:]
        self.bo = self._rand((1, 1, odim))

    # deterministic parameter generator
    def _rand(self, shape, scale=0.1):
        self._kidx += 1
        return scale * jax.random.normal(
            jax.random.fold_in(self._key, self._kidx), shape, jnp.float32)

    def _make_bn_fold(self, chans, eps=1e-5):
        # eval-mode BatchNorm folded with the conv bias into per-channel scale/shift.
        gamma = 1.0 + self._rand((chans,))
        beta = self._rand((chans,))
        mean = self._rand((chans,))
        var = 1.0 + jnp.abs(self._rand((chans,)))
        conv_bias = self._rand((chans,))
        s = gamma / jnp.sqrt(var + eps)
        return s, beta - mean * s + conv_bias * s

    # ------------------------------------------------------------------- forward
    def forward(self, xs, ilens):
        """xs: (B, Tmax, idim) f32; ilens: (B,) int32 -> ((B, Tmax, odim), ilens)."""
        B, T, _ = xs.shape
        L, Cb = self.conv_bank_layers, self.conv_bank_chans
        Hu, H = self.highway_units, self.H

        # pad once for every bank kernel size (asymmetric pads folded into tap offsets)
        xpad = jnp.pad(xs, ((0, 0), (self.PL, (L - 1) - self.PL), (0, 0)))

        front_args = (xpad, self.wbank, self.sbank, self.tbank,
                      self.wp1, self.sp1, self.tp1, self.wp2, self.sp2, self.tp2,
                      self.hw0_w, self.hw0_b, self.hwp_w, self.hwp_b,
                      self.hwg_w, self.hwg_b)
        # TODO(synk): at production sizes, tile T with a "parallel" grid axis (keeps both
        # v7x TensorCores busy and bounds VMEM); at demo sizes a single block wins.
        h = pl.pallas_call(
            functools.partial(_cbhg_front_kernel, mm_dtype=self.mm_dtype),
            out_shape=jax.ShapeDtypeStruct((B, T, Hu), jnp.float32),
            grid=(1,),
            in_specs=_full_specs(front_args),
            out_specs=pl.BlockSpec((B, T, Hu), lambda i: (0, 0, 0)),
            scratch_shapes=[
                pltpu.VMEM((B, T + 2 * self.Pp, L * Cb), jnp.float32),
                pltpu.VMEM((B, T + 2 * self.Pp, self.conv_proj_chans), jnp.float32)],
            compiler_params=pltpu.CompilerParams(dimension_semantics=("arbitrary",)),
        )(*front_args)

        # per-timestep validity mask == pack_padded / sort-by-length semantics
        mask = (jnp.arange(T, dtype=jnp.int32)[None, :, None]
                < ilens[:, None, None]).astype(jnp.float32)
        mask = jnp.broadcast_to(mask, (B, T, H))

        gru_args = (h, mask, self.wi_all, self.bi_all, self.whf3, self.whb3,
                    self.bhn_f, self.bhn_b, self.wo_f, self.wo_b, self.bo)
        ys = pl.pallas_call(
            functools.partial(_bigru_out_kernel, mm_dtype=self.mm_dtype),
            out_shape=jax.ShapeDtypeStruct((B, T, self.odim), jnp.float32),
            grid=(1,),
            in_specs=_full_specs(gru_args),
            out_specs=pl.BlockSpec((B, T, self.odim), lambda i: (0, 0, 0)),
            scratch_shapes=[pltpu.VMEM((6, B, T, H), jnp.float32),   # per-gate gi
                            pltpu.VMEM((B, T, H), jnp.float32),      # fwd outputs
                            pltpu.VMEM((B, T, H), jnp.float32),      # bwd outputs
                            pltpu.VMEM((B, H), jnp.float32),         # fwd state
                            pltpu.VMEM((B, H), jnp.float32)],        # bwd state
            compiler_params=pltpu.CompilerParams(dimension_semantics=("arbitrary",)),
        )(*gru_args)

        return ys, ilens


# ----------------------------------------------------------------------------- main

if __name__ == "__main__":
    key = jax.random.PRNGKey(0)
    B, T, idim, odim = 2, 16, 8, 12

    model = CBHGPallas(key, idim=idim, odim=odim,
                       conv_bank_layers=4, conv_bank_chans=16,
                       conv_proj_filts=3, conv_proj_chans=32,
                       highway_layers=2, highway_units=16, gru_units=32)

    xs = jax.random.normal(jax.random.fold_in(key, 12345), (B, T, idim), jnp.float32)
    ilens = jnp.array([16, 11], dtype=jnp.int32)

    ys, olens = model.forward(xs, ilens)
    ys = jax.block_until_ready(ys)
    assert ys.shape == (B, T, odim)
    assert bool(jnp.all(jnp.isfinite(ys)))
    print("KERNEL_OK")
</pallas_src>

<mosaic_0001>
module attributes {stable_mosaic.version = 11 : i64} {
  func.func @_cbhg_front_kernel(%arg0: i32, %arg1: memref<2x19x8xf32, #tpu.memory_space<vmem>>, %arg2: memref<4x8x64xf32, #tpu.memory_space<vmem>>, %arg3: memref<1x64xf32, #tpu.memory_space<vmem>>, %arg4: memref<1x64xf32, #tpu.memory_space<vmem>>, %arg5: memref<3x64x32xf32, #tpu.memory_space<vmem>>, %arg6: memref<1x32xf32, #tpu.memory_space<vmem>>, %arg7: memref<1x32xf32, #tpu.memory_space<vmem>>, %arg8: memref<3x32x8xf32, #tpu.memory_space<vmem>>, %arg9: memref<1x8xf32, #tpu.memory_space<vmem>>, %arg10: memref<1x8xf32, #tpu.memory_space<vmem>>, %arg11: memref<8x16xf32, #tpu.memory_space<vmem>>, %arg12: memref<1x16xf32, #tpu.memory_space<vmem>>, %arg13: memref<2x16x16xf32, #tpu.memory_space<vmem>>, %arg14: memref<2x1x16xf32, #tpu.memory_space<vmem>>, %arg15: memref<2x16x16xf32, #tpu.memory_space<vmem>>, %arg16: memref<2x1x16xf32, #tpu.memory_space<vmem>>, %arg17: memref<2x16x16xf32, #tpu.memory_space<vmem>>, %arg18: memref<2x18x64xf32, #tpu.memory_space<vmem>>, %arg19: memref<2x18x32xf32, #tpu.memory_space<vmem>>) attributes {dimension_semantics = [#tpu.dimension_semantics<arbitrary>], iteration_bounds = array<i64: 1>, scalar_prefetch = 0 : i64, scratch_operands = 2 : i64, tpu.core_type = #tpu.core_type<tc>, window_params = [{pipeline_mode = #tpu.pipeline_mode<synchronous>, transform_indices = @transform_0, window_bounds = array<i64: 2, 19, 8>}, {pipeline_mode = #tpu.pipeline_mode<synchronous>, transform_indices = @transform_1, window_bounds = array<i64: 4, 8, 64>}, {pipeline_mode = #tpu.pipeline_mode<synchronous>, transform_indices = @transform_2, window_bounds = array<i64: 1, 64>}, {pipeline_mode = #tpu.pipeline_mode<synchronous>, transform_indices = @transform_3, window_bounds = array<i64: 1, 64>}, {pipeline_mode = #tpu.pipeline_mode<synchronous>, transform_indices = @transform_4, window_bounds = array<i64: 3, 64, 32>}, {pipeline_mode = #tpu.pipeline_mode<synchronous>, transform_indices = @transform_5, window_bounds = array<i64: 1, 32>}, {pipeline_mode = #tpu.pipeline_mode<synchronous>, transform_indices = @transform_6, window_bounds = array<i64: 1, 32>}, {pipeline_mode = #tpu.pipeline_mode<synchronous>, transform_indices = @transform_7, window_bounds = array<i64: 3, 32, 8>}, {pipeline_mode = #tpu.pipeline_mode<synchronous>, transform_indices = @transform_8, window_bounds = array<i64: 1, 8>}, {pipeline_mode = #tpu.pipeline_mode<synchronous>, transform_indices = @transform_9, window_bounds = array<i64: 1, 8>}, {pipeline_mode = #tpu.pipeline_mode<synchronous>, transform_indices = @transform_10, window_bounds = array<i64: 8, 16>}, {pipeline_mode = #tpu.pipeline_mode<synchronous>, transform_indices = @transform_11, window_bounds = array<i64: 1, 16>}, {pipeline_mode = #tpu.pipeline_mode<synchronous>, transform_indices = @transform_12, window_bounds = array<i64: 2, 16, 16>}, {pipeline_mode = #tpu.pipeline_mode<synchronous>, transform_indices = @transform_13, window_bounds = array<i64: 2, 1, 16>}, {pipeline_mode = #tpu.pipeline_mode<synchronous>, transform_indices = @transform_14, window_bounds = array<i64: 2, 16, 16>}, {pipeline_mode = #tpu.pipeline_mode<synchronous>, transform_indices = @transform_15, window_bounds = array<i64: 2, 1, 16>}, {pipeline_mode = #tpu.pipeline_mode<synchronous>, transform_indices = @transform_16, window_bounds = array<i64: 2, 16, 16>}]} {
    %c0 = arith.constant 0 : index
    %c0_0 = arith.constant 0 : index
    %c0_1 = arith.constant 0 : index
    %0 = vector.load %arg1[%c0, %c0_0, %c0_1] : memref<2x19x8xf32, #tpu.memory_space<vmem>>, vector<2x16x8xf32>
    %1 = vector.shape_cast %0 : vector<2x16x8xf32> to vector<32x8xf32>
    %c0_2 = arith.constant 0 : index
    %c0_3 = arith.constant 0 : index
    %c0_4 = arith.constant 0 : index
    %2 = vector.load %arg2[%c0_2, %c0_3, %c0_4] : memref<4x8x64xf32, #tpu.memory_space<vmem>>, vector<1x8x64xf32>
    %3 = vector.shape_cast %2 : vector<1x8x64xf32> to vector<8x64xf32>
    %cst = arith.constant dense<0.000000e+00> : vector<32x64xf32>
    %4 = tpu.matmul %1, %3, %cst {dimension_numbers = #tpu.dot_dimension_numbers<[1], [0], [0], [1], [0, 0, 1, 1], [], []>} : vector<32x8xf32>, vector<8x64xf32>, vector<32x64xf32> -> vector<32x64xf32>
    %c0_5 = arith.constant 0 : index
    %c1 = arith.constant 1 : index
    %c0_6 = arith.constant 0 : index
    %5 = vector.load %arg1[%c0_5, %c1, %c0_6] : memref<2x19x8xf32, #tpu.memory_space<vmem>>, vector<2x16x8xf32>
    %6 = vector.shape_cast %5 : vector<2x16x8xf32> to vector<32x8xf32>
    %c1_7 = arith.constant 1 : index
    %c0_8 = arith.constant 0 : index
    %c0_9 = arith.constant 0 : index
    %7 = vector.load %arg2[%c1_7, %c0_8, %c0_9] : memref<4x8x64xf32, #tpu.memory_space<vmem>>, vector<1x8x64xf32>
    %8 = vector.shape_cast %7 : vector<1x8x64xf32> to vector<8x64xf32>
    %cst_10 = arith.constant dense<0.000000e+00> : vector<32x64xf32>
    %9 = tpu.matmul %6, %8, %cst_10 {dimension_numbers = #tpu.dot_dimension_numbers<[1], [0], [0], [1], [0, 0, 1, 1], [], []>} : vector<32x8xf32>, vector<8x64xf32>, vector<32x64xf32> -> vector<32x64xf32>
    %10 = arith.addf %4, %9 : vector<32x64xf32>
    %c0_11 = arith.constant 0 : index
    %c2 = arith.constant 2 : index
    %c0_12 = arith.constant 0 : index
    %11 = vector.load %arg1[%c0_11, %c2, %c0_12] : memref<2x19x8xf32, #tpu.memory_space<vmem>>, vector<2x16x8xf32>
    %12 = vector.shape_cast %11 : vector<2x16x8xf32> to vector<32x8xf32>
    %c2_13 = arith.constant 2 : index
    %c0_14 = arith.constant 0 : index
    %c0_15 = arith.constant 0 : index
    %13 = vector.load %arg2[%c2_13, %c0_14, %c0_15] : memref<4x8x64xf32, #tpu.memory_space<vmem>>, vector<1x8x64xf32>
    %14 = vector.shape_cast %13 : vector<1x8x64xf32> to vector<8x64xf32>
    %cst_16 = arith.constant dense<0.000000e+00> : vector<32x64xf32>
    %15 = tpu.matmul %12, %14, %cst_16 {dimension_numbers = #tpu.dot_dimension_numbers<[1], [0], [0], [1], [0, 0, 1, 1], [], []>} : vector<32x8xf32>, vector<8x64xf32>, vector<32x64xf32> -> vector<32x64xf32>
    %16 = arith.addf %10, %15 : vector<32x64xf32>
    %c0_17 = arith.constant 0 : index
    %c3 = arith.constant 3 : index
    %c0_18 = arith.constant 0 : index
    %17 = vector.load %arg1[%c0_17, %c3, %c0_18] : memref<2x19x8xf32, #tpu.memory_space<vmem>>, vector<2x16x8xf32>
    %18 = vector.shape_cast %17 : vector<2x16x8xf32> to vector<32x8xf32>
    %c3_19 = arith.constant 3 : index
    %c0_20 = arith.constant 0 : index
    %c0_21 = arith.constant 0 : index
    %19 = vector.load %arg2[%c3_19, %c0_20, %c0_21] : memref<4x8x64xf32, #tpu.memory_space<vmem>>, vector<1x8x64xf32>
    %20 = vector.shape_cast %19 : vector<1x8x64xf32> to vector<8x64xf32>
    %cst_22 = arith.constant dense<0.000000e+00> : vector<32x64xf32>
    %21 = tpu.matmul %18, %20, %cst_22 {dimension_numbers = #tpu.dot_dimension_numbers<[1], [0], [0], [1], [0, 0, 1, 1], [], []>} : vector<32x8xf32>, vector<8x64xf32>, vector<32x64xf32> -> vector<32x64xf32>
    %22 = arith.addf %16, %21 : vector<32x64xf32>
    %c0_23 = arith.constant 0 : index
    %c0_24 = arith.constant 0 : index
    %23 = vector.load %arg3[%c0_23, %c0_24] : memref<1x64xf32, #tpu.memory_space<vmem>>, vector<1x64xf32>
    %24 = vector.broadcast %23 : vector<1x64xf32> to vector<32x64xf32>
    %25 = arith.mulf %22, %24 : vector<32x64xf32>
    %c0_25 = arith.constant 0 : index
    %c0_26 = arith.constant 0 : index
    %26 = vector.load %arg4[%c0_25, %c0_26] : memref<1x64xf32, #tpu.memory_space<vmem>>, vector<1x64xf32>
    %27 = vector.broadcast %26 : vector<1x64xf32> to vector<32x64xf32>
    %28 = arith.addf %25, %27 : vector<32x64xf32>
    %cst_27 = arith.constant 0.000000e+00 : f32
    %29 = vector.broadcast %cst_27 : f32 to vector<32x64xf32>
    %30 = arith.maximumf %28, %29 : vector<32x64xf32>
    %cst_28 = arith.constant 0.000000e+00 : f32
    %31 = vector.broadcast %cst_28 : f32 to vector<2x1x64xf32>
    %32 = vector.shape_cast %30 : vector<32x64xf32> to vector<2x16x64xf32>
    %c0_29 = arith.constant 0 : index
    %c1_30 = arith.constant 1 : index
    %c0_31 = arith.constant 0 : index
    %33 = vector.load %arg18[%c0_29, %c1_30, %c0_31] : memref<2x18x64xf32, #tpu.memory_space<vmem>>, vector<2x16x64xf32>
    tpu.vector_store %arg18[%c0_29, %c1_30, %c0_31], %32 {strides = array<i32>} : memref<2x18x64xf32, #tpu.memory_space<vmem>>, vector<2x16x64xf32>,
    %c0_32 = arith.constant 0 : index
    %c17 = arith.constant 17 : index
    %c0_33 = arith.constant 0 : index
    %34 = vector.load %arg18[%c0_32, %c17, %c0_33] : memref<2x18x64xf32, #tpu.memory_space<vmem>>, vector<2x1x64xf32>
    tpu.vector_store %arg18[%c0_32, %c17, %c0_33], %31 {strides = array<i32>} : memref<2x18x64xf32, #tpu.memory_space<vmem>>, vector<2x1x64xf32>,
    %c0_34 = arith.constant 0 : index
    %c1_35 = arith.constant 1 : index
    %c0_36 = arith.constant 0 : index
    %35 = vector.load %arg18[%c0_34, %c1_35, %c0_36] : memref<2x18x64xf32, #tpu.memory_space<vmem>>, vector<2x16x64xf32>
    %c0_37 = arith.constant 0 : index
    %c2_38 = arith.constant 2 : index
    %c0_39 = arith.constant 0 : index
    %36 = vector.load %arg18[%c0_37, %c2_38, %c0_39] : memref<2x18x64xf32, #tpu.memory_space<vmem>>, vector<2x16x64xf32>
    %37 = arith.maximumf %35, %36 : vector<2x16x64xf32>
    %c0_40 = arith.constant 0 : index
    %c1_41 = arith.constant 1 : index
    %c0_42 = arith.constant 0 : index
    %38 = vector.load %arg18[%c0_40, %c1_41, %c0_42] : memref<2x18x64xf32, #tpu.memory_space<vmem>>, vector<2x16x64xf32>
    tpu.vector_store %arg18[%c0_40, %c1_41, %c0_42], %37 {strides = array<i32>} : memref<2x18x64xf32, #tpu.memory_space<vmem>>, vector<2x16x64xf32>,
    %c0_43 = arith.constant 0 : index
    %c0_44 = arith.constant 0 : index
    %c0_45 = arith.constant 0 : index
    %39 = vector.load %arg18[%c0_43, %c0_44, %c0_45] : memref<2x18x64xf32, #tpu.memory_space<vmem>>, vector<2x1x64xf32>
    tpu.vector_store %arg18[%c0_43, %c0_44, %c0_45], %31 {strides = array<i32>} : memref<2x18x64xf32, #tpu.memory_space<vmem>>, vector<2x1x64xf32>,
    %c0_46 = arith.constant 0 : index
    %c0_47 = arith.constant 0 : index
    %c0_48 = arith.constant 0 : index
    %40 = vector.load %arg18[%c0_46, %c0_47, %c0_48] : memref<2x18x64xf32, #tpu.memory_space<vmem>>, vector<2x16x64xf32>
    %41 = vector.shape_cast %40 : vector<2x16x64xf32> to vector<32x64xf32>
    %c0_49 = arith.constant 0 : index
    %c0_50 = arith.constant 0 : index
    %c0_51 = arith.constant 0 : index
    %42 = vector.load %arg5[%c0_49, %c0_50, %c0_51] : memref<3x64x32xf32, #tpu.memory_space<vmem>>, vector<1x64x32xf32>
    %43 = vector.shape_cast %42 : vector<1x64x32xf32> to vector<64x32xf32>
    %cst_52 = arith.constant dense<0.000000e+00> : vector<32x32xf32>
    %44 = tpu.matmul %41, %43, %cst_52 {dimension_numbers = #tpu.dot_dimension_numbers<[1], [0], [0], [1], [0, 0, 1, 1], [], []>} : vector<32x64xf32>, vector<64x32xf32>, vector<32x32xf32> -> vector<32x32xf32>
    %c0_53 = arith.constant 0 : index
    %c1_54 = arith.constant 1 : index
    %c0_55 = arith.constant 0 : index
    %45 = vector.load %arg18[%c0_53, %c1_54, %c0_55] : memref<2x18x64xf32, #tpu.memory_space<vmem>>, vector<2x16x64xf32>
    %46 = vector.shape_cast %45 : vector<2x16x64xf32> to vector<32x64xf32>
    %c1_56 = arith.constant 1 : index
    %c0_57 = arith.constant 0 : index
    %c0_58 = arith.constant 0 : index
    %47 = vector.load %arg5[%c1_56, %c0_57, %c0_58] : memref<3x64x32xf32, #tpu.memory_space<vmem>>, vector<1x64x32xf32>
    %48 = vector.shape_cast %47 : vector<1x64x32xf32> to vector<64x32xf32>
    %cst_59 = arith.constant dense<0.000000e+00> : vector<32x32xf32>
    %49 = tpu.matmul %46, %48, %cst_59 {dimension_numbers = #tpu.dot_dimension_numbers<[1], [0], [0], [1], [0, 0, 1, 1], [], []>} : vector<32x64xf32>, vector<64x32xf32>, vector<32x32xf32> -> vector<32x32xf32>
    %50 = arith.addf %44, %49 : vector<32x32xf32>
    %c0_60 = arith.constant 0 : index
    %c2_61 = arith.constant 2 : index
    %c0_62 = arith.constant 0 : index
    %51 = vector.load %arg18[%c0_60, %c2_61, %c0_62] : memref<2x18x64xf32, #tpu.memory_space<vmem>>, vector<2x16x64xf32>
    %52 = vector.shape_cast %51 : vector<2x16x64xf32> to vector<32x64xf32>
    %c2_63 = arith.constant 2 : index
    %c0_64 = arith.constant 0 : index
    %c0_65 = arith.constant 0 : index
    %53 = vector.load %arg5[%c2_63, %c0_64, %c0_65] : memref<3x64x32xf32, #tpu.memory_space<vmem>>, vector<1x64x32xf32>
    %54 = vector.shape_cast %53 : vector<1x64x32xf32> to vector<64x32xf32>
    %cst_66 = arith.constant dense<0.000000e+00> : vector<32x32xf32>
    %55 = tpu.matmul %52, %54, %cst_66 {dimension_numbers = #tpu.dot_dimension_numbers<[1], [0], [0], [1], [0, 0, 1, 1], [], []>} : vector<32x64xf32>, vector<64x32xf32>, vector<32x32xf32> -> vector<32x32xf32>
    %56 = arith.addf %50, %55 : vector<32x32xf32>
    %c0_67 = arith.constant 0 : index
    %c0_68 = arith.constant 0 : index
    %57 = vector.load %arg6[%c0_67, %c0_68] : memref<1x32xf32, #tpu.memory_space<vmem>>, vector<1x32xf32>
    %58 = vector.broadcast %57 : vector<1x32xf32> to vector<32x32xf32>
    %59 = arith.mulf %56, %58 : vector<32x32xf32>
    %c0_69 = arith.constant 0 : index
    %c0_70 = arith.constant 0 : index
    %60 = vector.load %arg7[%c0_69, %c0_70] : memref<1x32xf32, #tpu.memory_space<vmem>>, vector<1x32xf32>
    %61 = vector.broadcast %60 : vector<1x32xf32> to vector<32x32xf32>
    %62 = arith.addf %59, %61 : vector<32x32xf32>
    %cst_71 = arith.constant 0.000000e+00 : f32
    %63 = vector.broadcast %cst_71 : f32 to vector<32x32xf32>
    %64 = arith.maximumf %62, %63 : vector<32x32xf32>
    %cst_72 = arith.constant 0.000000e+00 : f32
    %65 = vector.broadcast %cst_72 : f32 to vector<2x1x32xf32>
    %c0_73 = arith.constant 0 : index
    %c0_74 = arith.constant 0 : index
    %c0_75 = arith.constant 0 : index
    %66 = vector.load %arg19[%c0_73, %c0_74, %c0_75] : memref<2x18x32xf32, #tpu.memory_space<vmem>>, vector<2x1x32xf32>
    tpu.vector_store %arg19[%c0_73, %c0_74, %c0_75], %65 {strides = array<i32>} : memref<2x18x32xf32, #tpu.memory_space<vmem>>, vector<2x1x32xf32>,
    %67 = vector.shape_cast %64 : vector<32x32xf32> to vector<2x16x32xf32>
    %c0_76 = arith.constant 0 : index
    %c1_77 = arith.constant 1 : index
    %c0_78 = arith.constant 0 : index
    %68 = vector.load %arg19[%c0_76, %c1_77, %c0_78] : memref<2x18x32xf32, #tpu.memory_space<vmem>>, vector<2x16x32xf32>
    tpu.vector_store %arg19[%c0_76, %c1_77, %c0_78], %67 {strides = array<i32>} : memref<2x18x32xf32, #tpu.memory_space<vmem>>, vector<2x16x32xf32>,
    %c0_79 = arith.constant 0 : index
    %c17_80 = arith.constant 17 : index
    %c0_81 = arith.constant 0 : index
    %69 = vector.load %arg19[%c0_79, %c17_80, %c0_81] : memref<2x18x32xf32, #tpu.memory_space<vmem>>, vector<2x1x32xf32>
    tpu.vector_store %arg19[%c0_79, %c17_80, %c0_81], %65 {strides = array<i32>} : memref<2x18x32xf32, #tpu.memory_space<vmem>>, vector<2x1x32xf32>,
    %c0_82 = arith.constant 0 : index
    %c0_83 = arith.constant 0 : index
    %c0_84 = arith.constant 0 : index
    %70 = vector.load %arg19[%c0_82, %c0_83, %c0_84] : memref<2x18x32xf32, #tpu.memory_space<vmem>>, vector<2x16x32xf32>
    %71 = vector.shape_cast %70 : vector<2x16x32xf32> to vector<32x32xf32>
    %c0_85 = arith.constant 0 : index
    %c0_86 = arith.constant 0 : index
    %c0_87 = arith.constant 0 : index
    %72 = vector.load %arg8[%c0_85, %c0_86, %c0_87] : memref<3x32x8xf32, #tpu.memory_space<vmem>>, vector<1x32x8xf32>
    %73 = vector.shape_cast %72 : vector<1x32x8xf32> to vector<32x8xf32>
    %cst_88 = arith.constant dense<0.000000e+00> : vector<32x8xf32>
    %74 = tpu.matmul %71, %73, %cst_88 {dimension_numbers = #tpu.dot_dimension_numbers<[1], [0], [0], [1], [0, 0, 1, 1], [], []>} : vector<32x32xf32>, vector<32x8xf32>, vector<32x8xf32> -> vector<32x8xf32>
    %c0_89 = arith.constant 0 : index
    %c1_90 = arith.constant 1 : index
    %c0_91 = arith.constant 0 : index
    %75 = vector.load %arg19[%c0_89, %c1_90, %c0_91] : memref<2x18x32xf32, #tpu.memory_space<vmem>>, vector<2x16x32xf32>
    %76 = vector.shape_cast %75 : vector<2x16x32xf32> to vector<32x32xf32>
    %c1_92 = arith.constant 1 : index
    %c0_93 = arith.constant 0 : index
    %c0_94 = arith.constant 0 : index
    %77 = vector.load %arg8[%c1_92, %c0_93, %c0_94] : memref<3x32x8xf32, #tpu.memory_space<vmem>>, vector<1x32x8xf32>
    %78 = vector.shape_cast %77 : vector<1x32x8xf32> to vector<32x8xf32>
    %cst_95 = arith.constant dense<0.000000e+00> : vector<32x8xf32>
    %79 = tpu.matmul %76, %78, %cst_95 {dimension_numbers = #tpu.dot_dimension_numbers<[1], [0], [0], [1], [0, 0, 1, 1], [], []>} : vector<32x32xf32>, vector<32x8xf32>, vector<32x8xf32> -> vector<32x8xf32>
    %80 = arith.addf %74, %79 : vector<32x8xf32>
    %c0_96 = arith.constant 0 : index
    %c2_97 = arith.constant 2 : index
    %c0_98 = arith.constant 0 : index
    %81 = vector.load %arg19[%c0_96, %c2_97, %c0_98] : memref<2x18x32xf32, #tpu.memory_space<vmem>>, vector<2x16x32xf32>
    %82 = vector.shape_cast %81 : vector<2x16x32xf32> to vector<32x32xf32>
    %c2_99 = arith.constant 2 : index
    %c0_100 = arith.constant 0 : index
    %c0_101 = arith.constant 0 : index
    %83 = vector.load %arg8[%c2_99, %c0_100, %c0_101] : memref<3x32x8xf32, #tpu.memory_space<vmem>>, vector<1x32x8xf32>
    %84 = vector.shape_cast %83 : vector<1x32x8xf32> to vector<32x8xf32>
    %cst_102 = arith.constant dense<0.000000e+00> : vector<32x8xf32>
    %85 = tpu.matmul %82, %84, %cst_102 {dimension_numbers = #tpu.dot_dimension_numbers<[1], [0], [0], [1], [0, 0, 1, 1], [], []>} : vector<32x32xf32>, vector<32x8xf32>, vector<32x8xf32> -> vector<32x8xf32>
    %86 = arith.addf %80, %85 : vector<32x8xf32>
    %c0_103 = arith.constant 0 : index
    %c0_104 = arith.constant 0 : index
    %87 = vector.load %arg9[%c0_103, %c0_104] : memref<1x8xf32, #tpu.memory_space<vmem>>, vector<1x8xf32>
    %88 = vector.broadcast %87 : vector<1x8xf32> to vector<32x8xf32>
    %89 = arith.mulf %86, %88 : vector<32x8xf32>
    %c0_105 = arith.constant 0 : index
    %c0_106 = arith.constant 0 : index
    %90 = vector.load %arg10[%c0_105, %c0_106] : memref<1x8xf32, #tpu.memory_space<vmem>>, vector<1x8xf32>
    %91 = vector.broadcast %90 : vector<1x8xf32> to vector<32x8xf32>
    %92 = arith.addf %89, %91 : vector<32x8xf32>
    %c0_107 = arith.constant 0 : index
    %c1_108 = arith.constant 1 : index
    %c0_109 = arith.constant 0 : index
    %93 = vector.load %arg1[%c0_107, %c1_108, %c0_109] : memref<2x19x8xf32, #tpu.memory_space<vmem>>, vector<2x16x8xf32>
    %94 = vector.shape_cast %93 : vector<2x16x8xf32> to vector<32x8xf32>
    %95 = arith.addf %94, %92 : vector<32x8xf32>
    %c0_110 = arith.constant 0 : index
    %c0_111 = arith.constant 0 : index
    %96 = vector.load %arg11[%c0_110, %c0_111] : memref<8x16xf32, #tpu.memory_space<vmem>>, vector<8x16xf32>
    %cst_112 = arith.constant dense<0.000000e+00> : vector<32x16xf32>
    %97 = tpu.matmul %95, %96, %cst_112 {dimension_numbers = #tpu.dot_dimension_numbers<[1], [0], [0], [1], [0, 0, 1, 1], [], []>} : vector<32x8xf32>, vector<8x16xf32>, vector<32x16xf32> -> vector<32x16xf32>
    %c0_113 = arith.constant 0 : index
    %c0_114 = arith.constant 0 : index
    %98 = vector.load %arg12[%c0_113, %c0_114] : memref<1x16xf32, #tpu.memory_space<vmem>>, vector<1x16xf32>
    %99 = vector.broadcast %98 : vector<1x16xf32> to vector<32x16xf32>
    %100 = arith.addf %97, %99 : vector<32x16xf32>
    %c0_115 = arith.constant 0 : index
    %c0_116 = arith.constant 0 : index
    %c0_117 = arith.constant 0 : index
    %101 = vector.load %arg13[%c0_115, %c0_116, %c0_117] : memref<2x16x16xf32, #tpu.memory_space<vmem>>, vector<1x16x16xf32>
    %102 = vector.shape_cast %101 : vector<1x16x16xf32> to vector<16x16xf32>
    %cst_118 = arith.constant dense<0.000000e+00> : vector<32x16xf32>
    %103 = tpu.matmul %100, %102, %cst_118 {dimension_numbers = #tpu.dot_dimension_numbers<[1], [0], [0], [1], [0, 0, 1, 1], [], []>} : vector<32x16xf32>, vector<16x16xf32>, vector<32x16xf32> -> vector<32x16xf32>
    %c0_119 = arith.constant 0 : index
    %c0_120 = arith.constant 0 : index
    %c0_121 = arith.constant 0 : index
    %104 = vector.load %arg14[%c0_119, %c0_120, %c0_121] : memref<2x1x16xf32, #tpu.memory_space<vmem>>, vector<1x1x16xf32>
    %105 = vector.shape_cast %104 : vector<1x1x16xf32> to vector<1x16xf32>
    %106 = vector.broadcast %105 : vector<1x16xf32> to vector<32x16xf32>
    %107 = arith.addf %103, %106 : vector<32x16xf32>
    %cst_122 = arith.constant 0.000000e+00 : f32
    %108 = vector.broadcast %cst_122 : f32 to vector<32x16xf32>
    %109 = arith.maximumf %107, %108 : vector<32x16xf32>
    %c0_123 = arith.constant 0 : index
    %c0_124 = arith.constant 0 : index
    %c0_125 = arith.constant 0 : index
    %110 = vector.load %arg15[%c0_123, %c0_124, %c0_125] : memref<2x16x16xf32, #tpu.memory_space<vmem>>, vector<1x16x16xf32>
    %111 = vector.shape_cast %110 : vector<1x16x16xf32> to vector<16x16xf32>
    %cst_126 = arith.constant dense<0.000000e+00> : vector<32x16xf32>
    %112 = tpu.matmul %100, %111, %cst_126 {dimension_numbers = #tpu.dot_dimension_numbers<[1], [0], [0], [1], [0, 0, 1, 1], [], []>} : vector<32x16xf32>, vector<16x16xf32>, vector<32x16xf32> -> vector<32x16xf32>
    %c0_127 = arith.constant 0 : index
    %c0_128 = arith.constant 0 : index
    %c0_129 = arith.constant 0 : index
    %113 = vector.load %arg16[%c0_127, %c0_128, %c0_129] : memref<2x1x16xf32, #tpu.memory_space<vmem>>, vector<1x1x16xf32>
    %114 = vector.shape_cast %113 : vector<1x1x16xf32> to vector<1x16xf32>
    %115 = vector.broadcast %114 : vector<1x16xf32> to vector<32x16xf32>
    %116 = arith.addf %112, %115 : vector<32x16xf32>
    %117 = arith.negf %116 : vector<32x16xf32>
    %118 = math.exp %117 : vector<32x16xf32>
    %cst_130 = arith.constant 1.000000e+00 : f32
    %119 = vector.broadcast %cst_130 : f32 to vector<32x16xf32>
    %120 = arith.addf %119, %118 : vector<32x16xf32>
    %121 = arith.divf %119, %120 : vector<32x16xf32>
    %122 = arith.subf %109, %100 : vector<32x16xf32>
    %123 = arith.mulf %121, %122 : vector<32x16xf32>
    %124 = arith.addf %100, %123 : vector<32x16xf32>
    %c1_131 = arith.constant 1 : index
    %c0_132 = arith.constant 0 : index
    %c0_133 = arith.constant 0 : index
    %125 = vector.load %arg13[%c1_131, %c0_132, %c0_133] : memref<2x16x16xf32, #tpu.memory_space<vmem>>, vector<1x16x16xf32>
    %126 = vector.shape_cast %125 : vector<1x16x16xf32> to vector<16x16xf32>
    %cst_134 = arith.constant dense<0.000000e+00> : vector<32x16xf32>
    %127 = tpu.matmul %124, %126, %cst_134 {dimension_numbers = #tpu.dot_dimension_numbers<[1], [0], [0], [1], [0, 0, 1, 1], [], []>} : vector<32x16xf32>, vector<16x16xf32>, vector<32x16xf32> -> vector<32x16xf32>
    %c1_135 = arith.constant 1 : index
    %c0_136 = arith.constant 0 : index
    %c0_137 = arith.constant 0 : index
    %128 = vector.load %arg14[%c1_135, %c0_136, %c0_137] : memref<2x1x16xf32, #tpu.memory_space<vmem>>, vector<1x1x16xf32>
    %129 = vector.shape_cast %128 : vector<1x1x16xf32> to vector<1x16xf32>
    %130 = vector.broadcast %129 : vector<1x16xf32> to vector<32x16xf32>
    %131 = arith.addf %127, %130 : vector<32x16xf32>
    %cst_138 = arith.constant 0.000000e+00 : f32
    %132 = vector.broadcast %cst_138 : f32 to vector<32x16xf32>
    %133 = arith.maximumf %131, %132 : vector<32x16xf32>
    %c1_139 = arith.constant 1 : index
    %c0_140 = arith.constant 0 : index
    %c0_141 = arith.constant 0 : index
    %134 = vector.load %arg15[%c1_139, %c0_140, %c0_141] : memref<2x16x16xf32, #tpu.memory_space<vmem>>, vector<1x16x16xf32>
    %135 = vector.shape_cast %134 : vector<1x16x16xf32> to vector<16x16xf32>
    %cst_142 = arith.constant dense<0.000000e+00> : vector<32x16xf32>
    %136 = tpu.matmul %124, %135, %cst_142 {dimension_numbers = #tpu.dot_dimension_numbers<[1], [0], [0], [1], [0, 0, 1, 1], [], []>} : vector<32x16xf32>, vector<16x16xf32>, vector<32x16xf32> -> vector<32x16xf32>
    %c1_143 = arith.constant 1 : index
    %c0_144 = arith.constant 0 : index
    %c0_145 = arith.constant 0 : index
    %137 = vector.load %arg16[%c1_143, %c0_144, %c0_145] : memref<2x1x16xf32, #tpu.memory_space<vmem>>, vector<1x1x16xf32>
    %138 = vector.shape_cast %137 : vector<1x1x16xf32> to vector<1x16xf32>
    %139 = vector.broadcast %138 : vector<1x16xf32> to vector<32x16xf32>
    %140 = arith.addf %136, %139 : vector<32x16xf32>
    %141 = arith.negf %140 : vector<32x16xf32>
    %142 = math.exp %141 : vector<32x16xf32>
    %cst_146 = arith.constant 1.000000e+00 : f32
    %143 = vector.broadcast %cst_146 : f32 to vector<32x16xf32>
    %144 = arith.addf %143, %142 : vector<32x16xf32>
    %145 = arith.divf %143, %144 : vector<32x16xf32>
    %146 = arith.subf %133, %124 : vector<32x16xf32>
    %147 = arith.mulf %145, %146 : vector<32x16xf32>
    %148 = arith.addf %124, %147 : vector<32x16xf32>
    %149 = vector.shape_cast %148 : vector<32x16xf32> to vector<2x16x16xf32>
    %c0_147 = arith.constant 0 : index
    %c0_148 = arith.constant 0 : index
    %c0_149 = arith.constant 0 : index
    %150 = vector.load %arg17[%c0_147, %c0_148, %c0_149] : memref<2x16x16xf32, #tpu.memory_space<vmem>>, vector<2x16x16xf32>
    tpu.vector_store %arg17[%c0_147, %c0_148, %c0_149], %149 {strides = array<i32>} : memref<2x16x16xf32, #tpu.memory_space<vmem>>, vector<2x16x16xf32>,
    return
  }
  func.func @transform_0(%arg0: i32) -> (i32, i32, i32) {
    %c0_i32 = arith.constant 0 : i32
    %c0_i32_0 = arith.constant 0 : i32
    %c0_i32_1 = arith.constant 0 : i32
    %c0_i32_2 = arith.constant 0 : i32
    return %c0_i32, %c0_i32_0, %c0_i32_1 : i32, i32, i32
  }
  func.func @transform_1(%arg0: i32) -> (i32, i32, i32) {
    %c0_i32 = arith.constant 0 : i32
    %c0_i32_0 = arith.constant 0 : i32
    %c0_i32_1 = arith.constant 0 : i32
    %c0_i32_2 = arith.constant 0 : i32
    return %c0_i32, %c0_i32_0, %c0_i32_1 : i32, i32, i32
  }
  func.func @transform_2(%arg0: i32) -> (i32, i32) {
    %c0_i32 = arith.constant 0 : i32
    %c0_i32_0 = arith.constant 0 : i32
    %c0_i32_1 = arith.constant 0 : i32
    return %c0_i32, %c0_i32_0 : i32, i32
  }
  func.func @transform_3(%arg0: i32) -> (i32, i32) {
    %c0_i32 = arith.constant 0 : i32
    %c0_i32_0 = arith.constant 0 : i32
    %c0_i32_1 = arith.constant 0 : i32
    return %c0_i32, %c0_i32_0 : i32, i32
  }
  func.func @transform_4(%arg0: i32) -> (i32, i32, i32) {
    %c0_i32 = arith.constant 0 : i32
    %c0_i32_0 = arith.constant 0 : i32
    %c0_i32_1 = arith.constant 0 : i32
    %c0_i32_2 = arith.constant 0 : i32
    return %c0_i32, %c0_i32_0, %c0_i32_1 : i32, i32, i32
  }
  func.func @transform_5(%arg0: i32) -> (i32, i32) {
    %c0_i32 = arith.constant 0 : i32
    %c0_i32_0 = arith.constant 0 : i32
    %c0_i32_1 = arith.constant 0 : i32
    return %c0_i32, %c0_i32_0 : i32, i32
  }
  func.func @transform_6(%arg0: i32) -> (i32, i32) {
    %c0_i32 = arith.constant 0 : i32
    %c0_i32_0 = arith.constant 0 : i32
    %c0_i32_1 = arith.constant 0 : i32
    return %c0_i32, %c0_i32_0 : i32, i32
  }
  func.func @transform_7(%arg0: i32) -> (i32, i32, i32) {
    %c0_i32 = arith.constant 0 : i32
    %c0_i32_0 = arith.constant 0 : i32
    %c0_i32_1 = arith.constant 0 : i32
    %c0_i32_2 = arith.constant 0 : i32
    return %c0_i32, %c0_i32_0, %c0_i32_1 : i32, i32, i32
  }
  func.func @transform_8(%arg0: i32) -> (i32, i32) {
    %c0_i32 = arith.constant 0 : i32
    %c0_i32_0 = arith.constant 0 : i32
    %c0_i32_1 = arith.constant 0 : i32
    return %c0_i32, %c0_i32_0 : i32, i32
  }
  func.func @transform_9(%arg0: i32) -> (i32, i32) {
    %c0_i32 = arith.constant 0 : i32
    %c0_i32_0 = arith.constant 0 : i32
    %c0_i32_1 = arith.constant 0 : i32
    return %c0_i32, %c0_i32_0 : i32, i32
  }
  func.func @transform_10(%arg0: i32) -> (i32, i32) {
    %c0_i32 = arith.constant 0 : i32
    %c0_i32_0 = arith.constant 0 : i32
    %c0_i32_1 = arith.constant 0 : i32
    return %c0_i32, %c0_i32_0 : i32, i32
  }
  func.func @transform_11(%arg0: i32) -> (i32, i32) {
    %c0_i32 = arith.constant 0 : i32
    %c0_i32_0 = arith.constant 0 : i32
    %c0_i32_1 = arith.constant 0 : i32
    return %c0_i32, %c0_i32_0 : i32, i32
  }
  func.func @transform_12(%arg0: i32) -> (i32, i32, i32) {
    %c0_i32 = arith.constant 0 : i32
    %c0_i32_0 = arith.constant 0 : i32
    %c0_i32_1 = arith.constant 0 : i32
    %c0_i32_2 = arith.constant 0 : i32
    return %c0_i32, %c0_i32_0, %c0_i32_1 : i32, i32, i32
  }
  func.func @transform_13(%arg0: i32) -> (i32, i32, i32) {
    %c0_i32 = arith.constant 0 : i32
    %c0_i32_0 = arith.constant 0 : i32
    %c0_i32_1 = arith.constant 0 : i32
    %c0_i32_2 = arith.constant 0 : i32
    return %c0_i32, %c0_i32_0, %c0_i32_1 : i32, i32, i32
  }
  func.func @transform_14(%arg0: i32) -> (i32, i32, i32) {
    %c0_i32 = arith.constant 0 : i32
    %c0_i32_0 = arith.constant 0 : i32
    %c0_i32_1 = arith.constant 0 : i32
    %c0_i32_2 = arith.constant 0 : i32
    return %c0_i32, %c0_i32_0, %c0_i32_1 : i32, i32, i32
  }
  func.func @transform_15(%arg0: i32) -> (i32, i32, i32) {
    %c0_i32 = arith.constant 0 : i32
    %c0_i32_0 = arith.constant 0 : i32
    %c0_i32_1 = arith.constant 0 : i32
    %c0_i32_2 = arith.constant 0 : i32
    return %c0_i32, %c0_i32_0, %c0_i32_1 : i32, i32, i32
  }
  func.func @transform_16(%arg0: i32) -> (i32, i32, i32) {
    %c0_i32 = arith.constant 0 : i32
    %c0_i32_0 = arith.constant 0 : i32
    %c0_i32_1 = arith.constant 0 : i32
    %c0_i32_2 = arith.constant 0 : i32
    return %c0_i32, %c0_i32_0, %c0_i32_1 : i32, i32, i32
  }
}

</mosaic_0001>

<bundles_post_ra>
// kernel: tpu_custom_call.1
= control target key start
LH: loop header
LB: loop body
LE: loop exit
PB: predicated region body
PF: predicated region fallthrough
CT: control target
= control target key end

     0   :  { %s2914_s0 = inlined_call_operand.vmem [shape: f32[2,19,8], index: 0, kind: input, shape index: {}]   ;;  %s2915_s1 = inlined_call_operand.vmem [shape: f32[4,8,64], index: 1, kind: input, shape index: {}]   ;;  %s2916_s2 = inlined_call_operand.vmem [shape: f32[1,64], index: 2, kind: input, shape index: {}]   ;;  %s2917_s3 = inlined_call_operand.vmem [shape: f32[1,64], index: 3, kind: input, shape index: {}]   ;;  %s2918_s4 = inlined_call_operand.vmem [shape: f32[3,64,32], index: 4, kind: input, shape index: {}]   ;;  %s2919_s5 = inlined_call_operand.vmem [shape: f32[1,32], index: 5, kind: input, shape index: {}]   ;;  %s2920_s6 = inlined_call_operand.vmem [shape: f32[1,32], index: 6, kind: input, shape index: {}]   ;;  %s2921_s7 = inlined_call_operand.vmem [shape: f32[3,32,8], index: 7, kind: input, shape index: {}]   ;;  %s2922_s8 = inlined_call_operand.vmem [shape: f32[1,8], index: 8, kind: input, shape index: {}]   ;;  %s2923_s9 = inlined_call_operand.vmem [shape: f32[1,8], index: 9, kind: input, shape index: {}]   ;;  %s2924_s10 = inlined_call_operand.vmem [shape: f32[8,16], index: 10, kind: input, shape index: {}]   ;;  %s2925_s11 = inlined_call_operand.vmem [shape: f32[1,16], index: 11, kind: input, shape index: {}]   ;;  %s2926_s12 = inlined_call_operand.vmem [shape: f32[2,16,16], index: 12, kind: input, shape index: {}]   ;;  %s2927_s13 = inlined_call_operand.vmem [shape: f32[2,1,16], index: 13, kind: input, shape index: {}]   ;;  %s2928_s14 = inlined_call_operand.vmem [shape: f32[2,16,16], index: 14, kind: input, shape index: {}]   ;;  %s2929_s15 = inlined_call_operand.vmem [shape: f32[2,1,16], index: 15, kind: input, shape index: {}]   ;;  %s2930_s16 = inlined_call_operand.hbm [shape: f32[2,16,16], index: 16, kind: output, shape index: {}]  }
   0x1   :  { %2932 = sst [smem:[#allocation7_spill]] %s2914_s0 }
   0x2   :  { %v1856_v0 = vld [vmem:[%s2915_s1 + $0x8] sm:$0xff]  ;;  %s2933_s25 = sld [smem:[#allocation7_spill]]  ;;  %vm65_vm0 = vcmask 64512   ;;  %v58_v3 = vld [vmem:[%s2915_s1] sm:$0xff]  ;;  %v1865_v5 = vld [vmem:[%s2915_s1 + $0x10] sm:$0xff] }
   0x3   :  { %2077 = vmatprep.subr.mxu0 %v1856_v0 }
   0x4   :  { %2078 = vmatpush3.msra.mxu0 %v1856_v0 }
   0x5   :  { %2085 = vmatprep.subr.mxu0 %v58_v3 }
   0x8   :  { %v2538_v1 = vld [vmem:[%s2933_s25 + $0x1] sm:$0xff]  ;;  %v2543_v2 = vld [vmem:[%s2933_s25 + $0x9] sm:$0xff]  ;;  %v2553_v4 = vld [vmem:[%s2933_s25 + $0x19] sm:$0xff] }
   0x9   :  { %2079 = vmatprep.mubr.msk.f32.mxu0 %vm65_vm0, %v2538_v1  ;;  %v2565_v6 = vld [vmem:[%s2933_s25 + $0x21] sm:$0xff] }
   0xa   :  { %2080 = vmatmul.mubr.msk.f32.vlgmr.msra.gmra.mrb[0].mxu0 %vm65_vm0, %v2543_v2  ;;  %v54_v7 = vld [vmem:[%s2933_s25] sm:$0xff] }
   0xb   :  { %2086 = vmatpush3.msra.mxu0 %v58_v3  ;;  %2082 = vmatprep.mubr.msk.f32.mxu0 %vm65_vm0, %v2553_v4 }
   0xc   :  { %2093 = vmatprep.subr.mxu0 %v1865_v5 }
   0xd   :  { %21 = vsyncpa [#allocation5], 0  ;;  %v55_v8 = vld [vmem:[%s2933_s25 + $0x8] sm:$0xff]  ;;  %v56_v9 = vld [vmem:[%s2933_s25 + $0x18] sm:$0xff]  ;;  %vm505_vm1 = vcmask 516096   ;;  %v2443_v20 = vmov 0.0  }
   0xe   :  { %2083 = vmatmul.mubr.msk.f32.gmra.mrb[2].mxu0 %vm65_vm0, %v2565_v6  ;;  %v1870_v10 = vld [vmem:[%s2915_s1 + $0x18] sm:$0xff]  ;;  %v57_v11 = vld [vmem:[%s2933_s25 + $0x20] sm:$0xff]  ;;  %v261_v13 = vld [vmem:[%s2933_s25 + $0xa] sm:$0xff]  ;;  %506 = vst.msk [vmem:[#allocation2 + $0x11] sm:$0x1] %vm505_vm1, %v2443_v20  ;;  %vm500_vm2 = vcmask 523264  }
   0xf   :  { %2087 = vmatprep.mubr.msk.f32.mxu0 %vm65_vm0, %v54_v7  ;;  %v260_v12 = vld [vmem:[%s2933_s25 + $0x2] sm:$0xff]  ;;  %v262_v14 = vld [vmem:[%s2933_s25 + $0x1a] sm:$0xff]  ;;  %v368_v17 = vld [vmem:[%s2933_s25 + $0xb] sm:$0xff]  ;;  %507 = vst.msk [vmem:[#allocation2 + $0x29] sm:$0x1] %vm505_vm1, %v2443_v20  ;;  %vm885_vm3 = vcmask 253952  }
  0x10   :  { %v263_v15 = vld [vmem:[%s2933_s25 + $0x22] sm:$0xff]  ;;  %524 = vst.msk [vmem:[#allocation2] sm:$0x1] %vm505_vm1, %v2443_v20  ;;  %525 = vst.msk [vmem:[#allocation2 + $0x18] sm:$0x1] %vm505_vm1, %v2443_v20  ;;  %v1879_v24 = vld [vmem:[%s2918_s4 + $0x50] sm:$0xff] }
  0x11   :  { %v367_v16 = vld [vmem:[%s2933_s25 + $0x3] sm:$0xff]  ;;  %v369_v18 = vld [vmem:[%s2933_s25 + $0x1b] sm:$0xff]  ;;  %v1883_v30 = vld [vmem:[%s2918_s4 + $0x70] sm:$0xff]  ;;  %886 = vst.msk [vmem:[#allocation3] sm:$0x1] %vm885_vm3, %v2443_v20  ;;  %vm888_vm4 = vcmask 261120  }
  0x12   :  { %2088 = vmatmul.mubr.msk.f32.vlgmr.msra.gmra.mrb[0].mxu0 %vm65_vm0, %v55_v8  ;;  %v370_v19 = vld [vmem:[%s2933_s25 + $0x23] sm:$0xff]  ;;  %v1880_v25 = vld [vmem:[%s2918_s4 + $0x58] sm:$0xff]  ;;  %v1875_v36 = vld [vmem:[%s2916_s2] ss:$0 sm:$0xff]  ;;  %887 = vst.msk [vmem:[#allocation3 + $0x18] sm:$0x1] %vm885_vm3, %v2443_v20 }
  0x13   :  { %2094 = vmatpush3.msra.mxu0 %v1865_v5  ;;  %2090 = vmatprep.mubr.msk.f32.mxu0 %vm65_vm0, %v56_v9  ;;  %v1877_v21 = vld [vmem:[%s2918_s4 + $0x40] sm:$0xff]  ;;  %v1878_v22 = vld [vmem:[%s2918_s4 + $0x48] sm:$0xff]  ;;  %v2269_v26 = vpack.c.bf16 %v1880_v25, %v1879_v24  ;;  %v1884_v31 = vld [vmem:[%s2918_s4 + $0x78] sm:$0xff]  ;;  %893 = vst.msk [vmem:[#allocation3 + $0x11] sm:$0x1] %vm885_vm3, %v2443_v20  ;;  %vm1360_vm5 = vcmask 130048  }
  0x14   :  { %2101 = vmatprep.subr.mxu0 %v1870_v10  ;;  %v2265_v23 = vpack.c.bf16 %v1878_v22, %v1877_v21  ;;  %v1881_v27 = vld [vmem:[%s2918_s4 + $0x60] sm:$0xff]  ;;  %v1882_v28 = vld [vmem:[%s2918_s4 + $0x68] sm:$0xff]  ;;  %v2277_v32 = vpack.c.bf16 %v1884_v31, %v1883_v30  ;;  %v532_v5 = vld [vmem:[%s2918_s4 + $0x10] sm:$0xff]  ;;  %894 = vst.msk [vmem:[#allocation3 + $0x29] sm:$0x1] %vm885_vm3, %v2443_v20 }
  0x15   :  { %v2273_v29 = vpack.c.bf16 %v1882_v28, %v1881_v27  ;;  %v530_v33 = vld [vmem:[%s2918_s4] sm:$0xff]  ;;  %v531_v34 = vld [vmem:[%s2918_s4 + $0x8] sm:$0xff]  ;;  %v533_v7 = vld [vmem:[%s2918_s4 + $0x18] sm:$0xff] }
  0x16   :  { %2091 = vmatmul.mubr.msk.f32.gmra.mrb[2].mxu0 %vm65_vm0, %v57_v11  ;;  %2266 = vmatprep.subr.bf16.mxu1 %v2265_v23  ;;  %v2281_v35 = vpack.c.bf16 %v531_v34, %v530_v33  ;;  %v1876_v38 = vld [vmem:[%s2917_s3] ss:$0 sm:$0xff]  ;;  %v2285_v9 = vpack.c.bf16 %v533_v7, %v532_v5  ;;  %v1894_v22 = vld [vmem:[%s2918_s4 + $0x88] sm:$0xff]  ;;  %v1895_v24 = vld [vmem:[%s2918_s4 + $0x90] sm:$0xff] }
  0x17   :  { %2095 = vmatprep.mubr.msk.f32.mxu0 %vm65_vm0, %v260_v12  ;;  %2268 = vmatpush3.bf16.msra.mxu1 %v2265_v23  ;;  %v534_v11 = vld [vmem:[%s2918_s4 + $0x20] sm:$0xff]  ;;  %v535_v12 = vld [vmem:[%s2918_s4 + $0x28] sm:$0xff]  ;;  %v1896_v25 = vld [vmem:[%s2918_s4 + $0x98] sm:$0xff] }
  0x18   :  { %2270 = vmatprep.subr.bf16.mxu1 %v2269_v26  ;;  %v1893_v21 = vld [vmem:[%s2918_s4 + $0x80] sm:$0xff]  ;;  %v1899_v33 = vld [vmem:[%s2918_s4 + $0xb0] sm:$0xff]  ;;  %v1900_v34 = vld [vmem:[%s2918_s4 + $0xb8] sm:$0xff] }
  0x19   :  { %v2297_v23 = vpack.c.bf16 %v1894_v22, %v1893_v21  ;;  %v1897_v28 = vld [vmem:[%s2918_s4 + $0xa0] sm:$0xff]  ;;  %v900_v20 = vld [vmem:[%s2921_s7 + $0x8] sm:$0xff]  ;;  %v901_v5 = vld [vmem:[%s2921_s7 + $0x10] sm:$0xff] }
  0x1a   :  { %2096 = vmatmul.mubr.msk.f32.vlgmr.msra.gmra.mrb[0].mxu0 %vm65_vm0, %v261_v13  ;;  %v902_v7 = vld [vmem:[%s2921_s7 + $0x18] sm:$0xff] }
  0x1b   :  { %2102 = vmatpush3.msra.mxu0 %v1870_v10  ;;  %2098 = vmatprep.mubr.msk.f32.mxu0 %vm65_vm0, %v262_v14  ;;  %v2289_v14 = vpack.c.bf16 %v535_v12, %v534_v11  ;;  %v1919_v11 = vld [vmem:[%s2921_s7 + $0x40] sm:$0xff]  ;;  %v1920_v12 = vld [vmem:[%s2921_s7 + $0x48] sm:$0xff] }
  0x1c   :  { %2272 = vmatpush3.bf16.msra.mxu1 %v2269_v26  ;;  %v2301_v26 = vpack.c.bf16 %v1896_v25, %v1895_v24 }
  0x1d   :  { %2274 = vmatprep.subr.bf16.mxu1 %v2273_v29 }
  0x1e   :  { %2099 = vmatmul.mubr.msk.f32.gmra.mrb[2].mxu0 %vm65_vm0, %v263_v15 }
  0x1f   :  { %2103 = vmatprep.mubr.msk.f32.mxu0 %vm65_vm0, %v367_v16  ;;  %v536_v16 = vld [vmem:[%s2918_s4 + $0x30] sm:$0xff] }
  0x20   :  { %2276 = vmatpush3.bf16.msra.mxu1 %v2273_v29  ;;  %v1898_v29 = vld [vmem:[%s2918_s4 + $0xa8] sm:$0xff] }
  0x21   :  { %2278 = vmatprep.subr.bf16.mxu1 %v2277_v32  ;;  %v2305_v31 = vpack.c.bf16 %v1898_v29, %v1897_v28  ;;  %v1246_v28 = vld [vmem:[%s2924_s10] sm:$0xff] }
  0x22   :  { %2104 = vmatmul.mubr.msk.f32.vlgmr.msra.gmra.mrb[0].mxu0 %vm65_vm0, %v368_v17  ;;  %v537_v17 = vld [vmem:[%s2918_s4 + $0x38] sm:$0xff]  ;;  %v1927_v29 = vld [vmem:[%s2922_s8] ss:$0 sm:$0xff] }
  0x23   :  { %2106 = vmatprep.mubr.msk.f32.mxu0 %vm65_vm0, %v369_v18 }
  0x24   :  { %2280 = vmatpush3.bf16.msra.mxu1 %v2277_v32 }
  0x25   :  { %2282 = vmatprep.subr.bf16.mxu1 %v2281_v35 }
  0x26   :  { %2107 = vmatmul.mubr.msk.f32.gmra.mrb[2].mxu0 %vm65_vm0, %v370_v19  ;;  %v2293_v19 = vpack.c.bf16 %v537_v17, %v536_v16  ;;  %v1921_v16 = vld [vmem:[%s2921_s7 + $0x50] sm:$0xff]  ;;  %v1922_v17 = vld [vmem:[%s2921_s7 + $0x58] sm:$0xff] }
  0xf5   :  { %v2105_v37 = vpop.f32.mrb[0].mxu0 }
  0xf6   :  { %v482_v39 = vmul.f32 %v2105_v37, %v1875_v36  ;;  %v451_v40 = vpop.f32.mrb[1].mxu0 }
  0xf7   :  { %v481_v41 = vmul.f32 %v1875_v36, %v451_v40  ;;  %v1907_v40 = vld [vmem:[%s2921_s7 + $0x20] sm:$0xff] }
  0xf8   :  { %v493_v42 = vadd.f32 %v1876_v38, %v482_v39 }
  0xf9   :  { %v492_v43 = vadd.f32 %v1876_v38, %v481_v41  ;;  %v2108_v44 = vpop.f32.mrb[2].mxu0  ;;  %v1908_v41 = vld [vmem:[%s2921_s7 + $0x28] sm:$0xff] }
  0xfa   :  { %v497_v45 = vmax.f32 %v493_v42, 0.0  ;;  %v484_v46 = vmul.f32 %v2108_v44, %v1875_v36  ;;  %v461_v47 = vpop.f32.mrb[3].mxu0  ;;  %v2313_v42 = vpack.c.bf16 %v1908_v41, %v1907_v40  ;;  %v1910_v44 = vld [vmem:[%s2921_s7 + $0x38] sm:$0xff] }
  0xfb   :  { %v496_v48 = vmax.f32 %v492_v43, 0.0  ;;  %v483_v49 = vmul.f32 %v1875_v36, %v461_v47  ;;  %v2309_v36 = vpack.c.bf16 %v1900_v34, %v1899_v33  ;;  %v1909_v43 = vld [vmem:[%s2921_s7 + $0x30] sm:$0xff] }
  0xfc   :  { %502 = vst.msk [vmem:[#allocation2 + $0x9] sm:$0xff] %vm500_vm2, %v497_v45  ;;  %v495_v50 = vadd.f32 %v1876_v38, %v484_v46  ;;  %2314 = vmatprep.subr.bf16.mxu0 %v2313_v42  ;;  %v2317_v45 = vpack.c.bf16 %v1910_v44, %v1909_v43  ;;  %v899_v46 = vld [vmem:[%s2921_s7] sm:$0xff] }
  0xfd   :  { %501 = vst.msk [vmem:[#allocation2 + $0x1] sm:$0xff] %vm500_vm2, %v496_v48  ;;  %v494_v51 = vadd.f32 %v1876_v38, %v483_v49  ;;  %2316 = vmatpush3.bf16.msra.mxu0 %v2313_v42  ;;  %v2321_v47 = vpack.c.bf16 %v900_v20, %v899_v46  ;;  %v1905_v48 = vld [vmem:[%s2919_s5] ss:$0 sm:$0xff] }
  0xfe   :  { %v499_v52 = vmax.f32 %v495_v50, 0.0  ;;  %2318 = vmatprep.subr.bf16.mxu0 %v2317_v45  ;;  %v1906_v50 = vld [vmem:[%s2920_s6] ss:$0 sm:$0xff] }
  0xff   :  { %v498_v53 = vmax.f32 %v494_v51, 0.0  ;;  %v1462_v20 = vld [vmem:[%s2928_s14] sm:$0xff] }
 0x100   :  { %504 = vst.msk [vmem:[#allocation2 + $0x21] sm:$0xff] %vm500_vm2, %v499_v52 }
 0x101   :  { %503 = vst.msk [vmem:[#allocation2 + $0x19] sm:$0xff] %vm500_vm2, %v498_v53  ;;  %2320 = vmatpush3.bf16.msra.mxu0 %v2317_v45 }
 0x102   :  { %2322 = vmatprep.subr.bf16.mxu0 %v2321_v47 }
 0x103   :  { %v509_v54 = vld [vmem:[#allocation2 + $0x9] sm:$0xff] }
 0x104   :  { %v513_v55 = vld [vmem:[#allocation2 + $0xa] sm:$0xff]  ;;  %v508_v56 = vld [vmem:[#allocation2 + $0x1] sm:$0xff] }
 0x105   :  { %v512_v57 = vld [vmem:[#allocation2 + $0x2] sm:$0xff]  ;;  %v517_v58 = vmax.f32 %v509_v54, %v513_v55 }
 0x106   :  { %v516_v59 = vmax.f32 %v508_v56, %v512_v57 }
 0x107   :  { %521 = vst.msk [vmem:[#allocation2 + $0x9] sm:$0xff] %vm500_vm2, %v517_v58  ;;  %v511_v60 = vld [vmem:[#allocation2 + $0x21] sm:$0xff] }
 0x108   :  { %520 = vst.msk [vmem:[#allocation2 + $0x1] sm:$0xff] %vm500_vm2, %v516_v59  ;;  %v515_v61 = vld [vmem:[#allocation2 + $0x22] sm:$0xff]  ;;  %v510_v62 = vld [vmem:[#allocation2 + $0x19] sm:$0xff] }
 0x109   :  { %v514_v63 = vld [vmem:[#allocation2 + $0x1a] sm:$0xff]  ;;  %v519_v0 = vmax.f32 %v511_v60, %v515_v61 }
 0x10a   :  { %v518_v3 = vmax.f32 %v510_v62, %v514_v63 }
 0x10b   :  { %523 = vst.msk [vmem:[#allocation2 + $0x21] sm:$0xff] %vm500_vm2, %v519_v0 }
 0x10c   :  { %522 = vst.msk [vmem:[#allocation2 + $0x19] sm:$0xff] %vm500_vm2, %v518_v3 }
 0x10e   :  { %v539_v10 = vld [vmem:[#allocation2 + $0x9] sm:$0xff] }
 0x10f   :  { %v538_v8 = vld [vmem:[#allocation2 + $0x1] sm:$0xff]  ;;  %v746_v37 = vld [vmem:[#allocation2 + $0xa] sm:$0xff] }
 0x110   :  { %2125 = vmatprep.mubr.msk.f32.mxu1 %vm500_vm2, %v538_v8  ;;  %v526_v18 = vld [vmem:[#allocation2] sm:$0xff]  ;;  %v527_v27 = vld [vmem:[#allocation2 + $0x8] sm:$0xff] }
 0x111   :  { %2126 = vmatmul.mubr.msk.f32.vlgmr.msra.gmra.mrb[0].mxu1 %vm500_vm2, %v539_v10 }
 0x112   :  { %2284 = vmatpush3.bf16.msra.mxu1 %v2281_v35  ;;  %v541_v15 = vld [vmem:[#allocation2 + $0x21] sm:$0xff] }
 0x113   :  { %v540_v13 = vld [vmem:[#allocation2 + $0x19] sm:$0xff]  ;;  %2286 = vmatprep.subr.bf16.mxu1 %v2285_v9  ;;  %v745_v35 = vld [vmem:[#allocation2 + $0x2] sm:$0xff] }
 0x114   :  { %2128 = vmatprep.mubr.msk.f32.mxu1 %vm500_vm2, %v540_v13  ;;  %v528_v30 = vld [vmem:[#allocation2 + $0x18] sm:$0xff]  ;;  %v529_v32 = vld [vmem:[#allocation2 + $0x20] sm:$0xff] }
 0x115   :  { %2129 = vmatmul.mubr.msk.f32.gmra.mrb[2].mxu1 %vm500_vm2, %v541_v15  ;;  %v747_v38 = vld [vmem:[#allocation2 + $0x1a] sm:$0xff]  ;;  %v748_v39 = vld [vmem:[#allocation2 + $0x22] sm:$0xff] }
 0x116   :  { %2288 = vmatpush3.bf16.msra.mxu1 %v2285_v9  ;;  %2147 = vmatprep.mubr.msk.f32.mxu1 %vm500_vm2, %v526_v18  ;;  %v2325_v9 = vpack.c.bf16 %v902_v7, %v901_v5 }
 0x117   :  { %2290 = vmatprep.subr.bf16.mxu1 %v2289_v14 }
 0x11a   :  { %2292 = vmatpush3.bf16.msra.mxu1 %v2289_v14  ;;  %v2329_v14 = vpack.c.bf16 %v1920_v12, %v1919_v11 }
 0x11b   :  { %2294 = vmatprep.subr.bf16.mxu1 %v2293_v19 }
 0x11e   :  { %2296 = vmatpush3.bf16.msra.mxu1 %v2293_v19  ;;  %v2333_v19 = vpack.c.bf16 %v1922_v17, %v1921_v16 }
 0x11f   :  { %2298 = vmatprep.subr.bf16.mxu1 %v2297_v23 }
 0x121   :  { %2148 = vmatmul.mubr.msk.f32.vlgmr.msra.gmra.mrb[0].mxu1 %vm500_vm2, %v527_v27 }
 0x122   :  { %2150 = vmatprep.mubr.msk.f32.mxu1 %vm500_vm2, %v528_v30  ;;  %2300 = vmatpush3.bf16.msra.mxu1 %v2297_v23 }
 0x123   :  { %2302 = vmatprep.subr.bf16.mxu1 %v2301_v26 }
 0x125   :  { %2151 = vmatmul.mubr.msk.f32.gmra.mrb[2].mxu1 %vm500_vm2, %v529_v32 }
 0x126   :  { %2304 = vmatpush3.bf16.msra.mxu1 %v2301_v26  ;;  %2169 = vmatprep.mubr.msk.f32.mxu1 %vm500_vm2, %v745_v35 }
 0x127   :  { %2306 = vmatprep.subr.bf16.mxu1 %v2305_v31 }
 0x12a   :  { %2308 = vmatpush3.bf16.msra.mxu1 %v2305_v31  ;;  %v1928_v31 = vld [vmem:[%s2923_s9] ss:$0 sm:$0xff] }
 0x12b   :  { %2310 = vmatprep.subr.bf16.mxu1 %v2309_v36 }
 0x12e   :  { %2312 = vmatpush3.bf16.msra.mxu1 %v2309_v36 }
 0x12f   :  { %2353 = vmatprep.subr.mxu1 %v1246_v28 }
 0x131   :  { %2170 = vmatmul.mubr.msk.f32.vlgmr.msra.gmra.mrb[0].mxu1 %vm500_vm2, %v746_v37 }
 0x132   :  { %2172 = vmatprep.mubr.msk.f32.mxu1 %vm500_vm2, %v747_v38  ;;  %2354 = vmatpush3.msra.mxu1 %v1246_v28 }
 0x135   :  { %2173 = vmatmul.mubr.msk.f32.gmra.mrb[2].mxu1 %vm500_vm2, %v748_v39 }
 0x204   :  { %v2171_v49 = vpop.f32.mrb[0].mxu1 }
 0x205   :  { %v867_v51 = vmul.f32 %v2171_v49, %v1905_v48  ;;  %v836_v52 = vpop.f32.mrb[1].mxu1 }
 0x206   :  { %v866_v53 = vmul.f32 %v1905_v48, %v836_v52 }
 0x207   :  { %v878_v54 = vadd.f32 %v1906_v50, %v867_v51 }
 0x208   :  { %v877_v55 = vadd.f32 %v1906_v50, %v866_v53  ;;  %v2174_v56 = vpop.f32.mrb[2].mxu1 }
 0x209   :  { %v882_v57 = vmax.f32 %v878_v54, 0.0  ;;  %v869_v58 = vmul.f32 %v2174_v56, %v1905_v48  ;;  %v846_v59 = vpop.f32.mrb[3].mxu1 }
 0x20a   :  { %v881_v60 = vmax.f32 %v877_v55, 0.0  ;;  %v868_v61 = vmul.f32 %v1905_v48, %v846_v59  ;;  %v1929_v48 = vld [vmem:[%s2925_s11] ss:$0 sm:$0xff]  ;;  %v1948_v59 = vld [vmem:[%s2926_s12 + $0x10] sm:$0xff] }
 0x20b   :  { %890 = vst.msk [vmem:[#allocation3 + $0x9] sm:$0xff] %vm888_vm4, %v882_v57  ;;  %v880_v62 = vadd.f32 %v1906_v50, %v869_v58  ;;  %v1956_v57 = vld [vmem:[%s2928_s14 + $0x10] sm:$0xff]  ;;  %v1957_v58 = vld [vmem:[%s2928_s14 + $0x18] sm:$0xff] }
 0x20c   :  { %889 = vst.msk [vmem:[#allocation3 + $0x1] sm:$0xff] %vm888_vm4, %v881_v60  ;;  %v879_v63 = vadd.f32 %v1906_v50, %v868_v61  ;;  %v2349_v60 = vpack.c.bf16 %v1957_v58, %v1956_v57  ;;  %v1949_v61 = vld [vmem:[%s2926_s12 + $0x18] sm:$0xff] }
 0x20d   :  { %v884_v0 = vmax.f32 %v880_v62, 0.0  ;;  %v2345_v62 = vpack.c.bf16 %v1949_v61, %v1948_v59 }
 0x20e   :  { %v883_v3 = vmax.f32 %v879_v63, 0.0  ;;  %v1939_v63 = vld [vmem:[%s2929_s15] ss:$0 sm:$0xff] }
 0x20f   :  { %892 = vst.msk [vmem:[#allocation3 + $0x21] sm:$0xff] %vm888_vm4, %v884_v0 }
 0x210   :  { %891 = vst.msk [vmem:[#allocation3 + $0x19] sm:$0xff] %vm888_vm4, %v883_v3 }
 0x212   :  { %v904_v10 = vld [vmem:[#allocation3 + $0x9] sm:$0xff] }
 0x213   :  { %v903_v8 = vld [vmem:[#allocation3 + $0x1] sm:$0xff]  ;;  %v1107_v25 = vld [vmem:[#allocation3 + $0xa] sm:$0xff] }
 0x214   :  { %2183 = vmatprep.mubr.msk.f32.mxu0 %vm888_vm4, %v903_v8  ;;  %v895_v18 = vld [vmem:[#allocation3] sm:$0xff]  ;;  %v896_v21 = vld [vmem:[#allocation3 + $0x8] sm:$0xff] }
 0x215   :  { %2184 = vmatmul.mubr.msk.f32.vlgmr.msra.gmra.mrb[4].mxu0 %vm888_vm4, %v904_v10  ;;  %v1106_v24 = vld [vmem:[#allocation3 + $0x2] sm:$0xff] }
 0x216   :  { %2324 = vmatpush3.bf16.msra.mxu0 %v2321_v47  ;;  %v906_v15 = vld [vmem:[#allocation3 + $0x21] sm:$0xff] }
 0x217   :  { %v905_v13 = vld [vmem:[#allocation3 + $0x19] sm:$0xff]  ;;  %2326 = vmatprep.subr.bf16.mxu0 %v2325_v9  ;;  %v1109_v27 = vld [vmem:[#allocation3 + $0x22] sm:$0xff] }
 0x218   :  { %2186 = vmatprep.mubr.msk.f32.mxu0 %vm888_vm4, %v905_v13  ;;  %v897_v22 = vld [vmem:[#allocation3 + $0x18] sm:$0xff]  ;;  %v898_v23 = vld [vmem:[#allocation3 + $0x20] sm:$0xff] }
 0x219   :  { %2187 = vmatmul.mubr.msk.f32.gmra.mrb[6].mxu0 %vm888_vm4, %v906_v15  ;;  %v1108_v26 = vld [vmem:[#allocation3 + $0x1a] sm:$0xff] }
 0x21a   :  { %2328 = vmatpush3.bf16.msra.mxu0 %v2325_v9  ;;  %2197 = vmatprep.mubr.msk.f32.mxu0 %vm888_vm4, %v895_v18 }
 0x21b   :  { %2330 = vmatprep.subr.bf16.mxu0 %v2329_v14 }
 0x21d   :  { %2198 = vmatmul.mubr.msk.f32.vlgmr.msra.gmra.mrb[4].mxu0 %vm888_vm4, %v896_v21 }
 0x21e   :  { %2200 = vmatprep.mubr.msk.f32.mxu0 %vm888_vm4, %v897_v22  ;;  %2332 = vmatpush3.bf16.msra.mxu0 %v2329_v14 }
 0x21f   :  { %2334 = vmatprep.subr.bf16.mxu0 %v2333_v19 }
 0x221   :  { %2201 = vmatmul.mubr.msk.f32.gmra.mrb[6].mxu0 %vm888_vm4, %v898_v23  ;;  %v1934_v23 = vld [vmem:[%s2927_s13] ss:$0 sm:$0xff] }
 0x222   :  { %2336 = vmatpush3.bf16.msra.mxu0 %v2333_v19  ;;  %2211 = vmatprep.mubr.msk.f32.mxu0 %vm888_vm4, %v1106_v24 }
 0x223   :  { %2217 = vmatprep.subr.mxu0 %v1246_v28 }
 0x225   :  { %2212 = vmatmul.mubr.msk.f32.vlgmr.msra.gmra.mrb[4].mxu0 %vm888_vm4, %v1107_v25 }
 0x226   :  { %2214 = vmatprep.mubr.msk.f32.mxu0 %vm888_vm4, %v1108_v26  ;;  %2218 = vmatpush3.msra.mxu0 %v1246_v28 }
 0x229   :  { %2215 = vmatmul.mubr.msk.f32.gmra.mrb[6].mxu0 %vm888_vm4, %v1109_v27 }
 0x2f8   :  { %v2213_v30 = vpop.f32.mrb[4].mxu0 }
 0x2f9   :  { %v1224_v32 = vmul.f32 %v2213_v30, %v1927_v29  ;;  %v1193_v33 = vpop.f32.mrb[5].mxu0 }
 0x2fa   :  { %v1223_v34 = vmul.f32 %v1927_v29, %v1193_v33 }
 0x2fb   :  { %v1235_v35 = vadd.f32 %v1928_v31, %v1224_v32 }
 0x2fc   :  { %v1234_v36 = vadd.f32 %v1928_v31, %v1223_v34  ;;  %v2216_v37 = vpop.f32.mrb[6].mxu0 }
 0x2fd   :  { %v1226_v38 = vmul.f32 %v2216_v37, %v1927_v29  ;;  %v1203_v39 = vpop.f32.mrb[7].mxu0  ;;  %v1243_v42 = vadd.f32 %v1235_v35, %v2543_v2  ;;  %v1352_v2 = vld [vmem:[%s2926_s12 + $0x8] sm:$0xff] }
 0x2fe   :  { %v1242_v40 = vadd.f32 %v1234_v36, %v2538_v1  ;;  %v1225_v41 = vmul.f32 %v1927_v29, %v1203_v39  ;;  %v1351_v1 = vld [vmem:[%s2926_s12] sm:$0xff] }
 0x2ff   :  { %v1237_v43 = vadd.f32 %v1928_v31, %v1226_v38  ;;  %v2337_v47 = vpack.c.bf16 %v1352_v2, %v1351_v1 }
 0x300   :  { %v1236_v44 = vadd.f32 %v1928_v31, %v1225_v41  ;;  %2219 = vmatprep.mubr.msk.f32.mxu0 %vm65_vm0, %v1242_v40 }
 0x301   :  { %2220 = vmatmul.mubr.msk.f32.vlgmr.msra.gmra.mrb[8].mxu0 %vm65_vm0, %v1243_v42  ;;  %v1245_v46 = vadd.f32 %v1237_v43, %v2565_v6  ;;  %2338 = vmatprep.subr.bf16.mxu0 %v2337_v47 }
 0x302   :  { %v1244_v45 = vadd.f32 %v1236_v44, %v2553_v4  ;;  %v1463_v4 = vld [vmem:[%s2928_s14 + $0x8] sm:$0xff]  ;;  %2340 = vmatpush3.bf16.msra.mxu0 %v2337_v47 }
 0x303   :  { %v2341_v6 = vpack.c.bf16 %v1463_v4, %v1462_v20  ;;  %2346 = vmatprep.subr.bf16.mxu0 %v2345_v62 }
 0x304   :  { %2222 = vmatprep.mubr.msk.f32.mxu1 %vm65_vm0, %v1244_v45 }
 0x305   :  { %2223 = vmatmul.mubr.msk.f32.vlgmr.msra.gmra.mrb[4].mxu1 %vm65_vm0, %v1245_v46  ;;  %2342 = vmatprep.subr.bf16.mxu1 %v2341_v6 }
 0x306   :  { %2344 = vmatpush3.bf16.msra.mxu1 %v2341_v6 }
 0x307   :  { %2350 = vmatprep.subr.bf16.mxu1 %v2349_v60 }
 0x3d4   :  { %v2221_v49 = vpop.f32.mrb[8].mxu0 }
 0x3d5   :  { %v1332_v50 = vpop.f32.mrb[9].mxu0  ;;  %v2818_v52 = vadd.f32 %v2221_v49, %v1929_v48  ;;  %v1959_v49 = vld [vmem:[%s2929_s15 + $0x1] ss:$0 sm:$0xff] }
 0x3d6   :  { %v2816_v51 = vadd.f32 %v1929_v48, %v1332_v50 }
 0x3d8   :  { %v2224_v53 = vpop.f32.mrb[4].mxu1  ;;  %2229 = vmatprep.mubr.msk.f32.mxu0 %vm1360_vm5, %v2816_v51  ;;  %2239 = vmatprep.mubr.msk.f32.mxu1 %vm1360_vm5, %v2816_v51 }
 0x3d9   :  { %v1342_v54 = vpop.f32.mrb[5].mxu1  ;;  %2230 = vmatmul.mubr.msk.f32.vlgmr.msra.gmra.mrb[10].mxu0 %vm1360_vm5, %v2818_v52  ;;  %2240 = vmatmul.mubr.msk.f32.vlgmr.msra.gmra.mrb[6].mxu1 %vm1360_vm5, %v2818_v52  ;;  %v2830_v56 = vadd.f32 %v2224_v53, %v1929_v48 }
 0x3da   :  { %v2828_v55 = vadd.f32 %v1929_v48, %v1342_v54  ;;  %2352 = vmatpush3.bf16.msra.mxu1 %v2349_v60  ;;  %2348 = vmatpush3.bf16.msra.mxu0 %v2345_v62 }
 0x3dc   :  { %2232 = vmatprep.mubr.msk.f32.mxu0 %vm1360_vm5, %v2828_v55  ;;  %2242 = vmatprep.mubr.msk.f32.mxu1 %vm1360_vm5, %v2828_v55 }
 0x3dd   :  { %2233 = vmatmul.mubr.msk.f32.gmra.mrb[12].mxu0 %vm1360_vm5, %v2830_v56  ;;  %2243 = vmatmul.mubr.msk.f32.gmra.mrb[8].mxu1 %vm1360_vm5, %v2830_v56 }
 0x4ac   :  { %v2231_v0 = vpop.f32.mrb[10].mxu0  ;;  %v2241_v3 = vpop.f32.mrb[6].mxu1 }
 0x4ad   :  { %v1543_v5 = vadd.f32 %v2241_v3, %v1939_v63  ;;  %v1439_v7 = vpop.f32.mrb[11].mxu0  ;;  %v1537_v8 = vpop.f32.mrb[7].mxu1  ;;  %v1445_v27 = vadd.f32 %v2231_v0, %v1934_v23 }
 0x4ae   :  { %v1538_v9 = vadd.f32 %v1939_v63, %v1537_v8  ;;  %v1440_v29 = vadd.f32 %v1934_v23, %v1439_v7  ;;  %v1951_v8 = vld [vmem:[%s2927_s13 + $0x1] ss:$0 sm:$0xff]  ;;  %s2444_s13 = smov [#allocation4]  }
 0x4af   :  { %v1945_v10 = vmul.f32 -1.442695, %v1543_v5  ;;  %v1459_v32 = vmax.f32 %v1445_v27, 0.0  ;;  %s1845_s2 = sshll.u32 %s2444_s13, 4  ;;  %s1846_s2 = int_to_ptr.vmem [resolvable:$true] %s1845_s2 }
 0x4b0   :  { %v1944_v11 = vmul.f32 -1.442695, %v1538_v9  ;;  %v2234_v12 = vpop.f32.mrb[12].mxu0  ;;  %v2244_v13 = vpop.f32.mrb[8].mxu1  ;;  %v1458_v34 = vmax.f32 %v1440_v29, 0.0  ;;  %s2419_s3 = scalar_lea.vmem %s1846_s2, 512  ;;  %p2424_p1 = scmp.lt.s32.totalorder %s1846_s2, %s1846_s2 }
 0x4b1   :  { %2387 = vpow2.f32 %v1945_v10  ;;  %v1553_v14 = vadd.f32 %v2244_v13, %v1939_v63  ;;  %v1449_v15 = vpop.f32.mrb[13].mxu0  ;;  %v1547_v16 = vpop.f32.mrb[9].mxu1  ;;  %v1455_v33 = vadd.f32 %v2234_v12, %v1934_v23  ;;  %v1581_v36 = vsub.f32 %v1459_v32, %v2818_v52  ;;  %p2420_p0 = scmp.ne.s32.totalorder %s1846_s2, %s2419_s3  ;;  %p2425_p2 = scmp.lt.s32.totalorder %s2419_s3, %s2419_s3 }
 0x4b2   :  { %2389 = vpow2.f32 %v1944_v11  ;;  %v1548_v17 = vadd.f32 %v1939_v63, %v1547_v16  ;;  %v1450_v35 = vadd.f32 %v1934_v23, %v1449_v15  ;;  %v1580_v39 = vsub.f32 %v1458_v34, %v2816_v51 }
 0x4b3   :  { %v1947_v18 = vmul.f32 -1.442695, %v1553_v14  ;;  %v1461_v37 = vmax.f32 %v1455_v33, 0.0  ;;  %p2426_p3 = por %p2425_p2, %p2424_p1 }
 0x4b4   :  { %v1946_v19 = vmul.f32 -1.442695, %v1548_v17  ;;  %v1460_v40 = vmax.f32 %v1450_v35, 0.0 }
 0x4b5   :  { %2391 = vpow2.f32 %v1947_v18  ;;  %v1583_v44 = vsub.f32 %v1461_v37, %v2830_v56  ;;  %p2427_p4 = pnand %p2426_p3, %p2420_p0 }
 0x4b6   :  { %2393 = vpow2.f32 %v1946_v19  ;;  %v1582_v46 = vsub.f32 %v1460_v40, %v2828_v55 }
 0x4bb   :  { %v2388_v21 = vpop.eup %2387 }
 0x4bc   :  { %v2390_v22 = vpop.eup %2389  ;;  %v1569_v24 = vadd.f32 1.0, %v2388_v21 }
 0x4bd   :  { %v1568_v25 = vadd.f32 1.0, %v2390_v22 }
 0x4be   :  { %2395 = vrcp.f32 %v1569_v24 }
 0x4bf   :  { %v2392_v26 = vpop.eup %2391  ;;  %2397 = vrcp.f32 %v1568_v25 }
 0x4c0   :  { %v2394_v28 = vpop.eup %2393  ;;  %v1571_v30 = vadd.f32 1.0, %v2392_v26 }
 0x4c1   :  { %v1570_v31 = vadd.f32 1.0, %v2394_v28 }
 0x4c2   :  { %2399 = vrcp.f32 %v1571_v30 }
 0x4c3   :  { %2401 = vrcp.f32 %v1570_v31 }
 0x4c8   :  { %v2396_v38 = vpop.eup %2395 }
 0x4c9   :  { %v2398_v41 = vpop.eup %2397  ;;  %v1585_v42 = vmul.f32 %v2396_v38, %v1581_v36 }
 0x4ca   :  { %v1584_v43 = vmul.f32 %v2398_v41, %v1580_v39 }
 0x4cb   :  { %v1589_v20 = vadd.f32 %v1585_v42, %v2818_v52 }
 0x4cc   :  { %v2400_v45 = vpop.eup %2399  ;;  %v2863_v1 = vadd.f32 %v1584_v43, %v2816_v51 }
 0x4cd   :  { %v2402_v2 = vpop.eup %2401  ;;  %v1587_v47 = vmul.f32 %v2400_v45, %v1583_v44 }
 0x4ce   :  { %2249 = vmatprep.mubr.msk.f32.mxu0 %vm1360_vm5, %v2863_v1  ;;  %2259 = vmatprep.mubr.msk.f32.mxu1 %vm1360_vm5, %v2863_v1  ;;  %v1586_v4 = vmul.f32 %v2402_v2, %v1582_v46 }
 0x4cf   :  { %2250 = vmatmul.mubr.msk.f32.vlgmr.msra.gmra.mrb[14].mxu0 %vm1360_vm5, %v1589_v20  ;;  %2260 = vmatmul.mubr.msk.f32.vlgmr.msra.gmra.mrb[10].mxu1 %vm1360_vm5, %v1589_v20  ;;  %v2876_v48 = vadd.f32 %v1587_v47, %v2830_v56 }
 0x4d0   :  { %v2873_v6 = vadd.f32 %v1586_v4, %v2828_v55 }
 0x4d2   :  { %2252 = vmatprep.mubr.msk.f32.mxu0 %vm1360_vm5, %v2873_v6  ;;  %2262 = vmatprep.mubr.msk.f32.mxu1 %vm1360_vm5, %v2873_v6 }
 0x4d3   :  { %2253 = vmatmul.mubr.msk.f32.gmra.mrb[16].mxu0 %vm1360_vm5, %v2876_v48  ;;  %2263 = vmatmul.mubr.msk.f32.gmra.mrb[12].mxu1 %vm1360_vm5, %v2876_v48 }
 0x5a2   :  { %v2251_v50 = vpop.f32.mrb[14].mxu0  ;;  %v2261_v51 = vpop.f32.mrb[10].mxu1 }
 0x5a3   :  { %v1787_v52 = vadd.f32 %v2261_v51, %v1959_v49  ;;  %v1681_v53 = vpop.f32.mrb[15].mxu0  ;;  %v1781_v54 = vpop.f32.mrb[11].mxu1  ;;  %v1687_v12 = vadd.f32 %v2251_v50, %v1951_v8 }
 0x5a4   :  { %v1782_v55 = vadd.f32 %v1959_v49, %v1781_v54  ;;  %v1682_v14 = vadd.f32 %v1951_v8, %v1681_v53 }
 0x5a5   :  { %v1965_v56 = vmul.f32 -1.442695, %v1787_v52  ;;  %v1701_v17 = vmax.f32 %v1687_v12, 0.0 }
 0x5a6   :  { %v1964_v57 = vmul.f32 -1.442695, %v1782_v55  ;;  %v2254_v58 = vpop.f32.mrb[16].mxu0  ;;  %v2264_v59 = vpop.f32.mrb[12].mxu1  ;;  %v1700_v19 = vmax.f32 %v1682_v14, 0.0 }
 0x5a7   :  { %2403 = vpow2.f32 %v1965_v56  ;;  %v1797_v60 = vadd.f32 %v2264_v59, %v1959_v49  ;;  %v1691_v61 = vpop.f32.mrb[17].mxu0  ;;  %v1791_v62 = vpop.f32.mrb[13].mxu1  ;;  %v1697_v18 = vadd.f32 %v2254_v58, %v1951_v8  ;;  %v1825_v22 = vsub.f32 %v1701_v17, %v1589_v20 }
 0x5a8   :  { %2405 = vpow2.f32 %v1964_v57  ;;  %v1792_v63 = vadd.f32 %v1959_v49, %v1791_v62  ;;  %v1692_v21 = vadd.f32 %v1951_v8, %v1691_v61  ;;  %v1824_v25 = vsub.f32 %v1700_v19, %v2863_v1 }
 0x5a9   :  { %v1967_v0 = vmul.f32 -1.442695, %v1797_v60  ;;  %v1703_v23 = vmax.f32 %v1697_v18, 0.0 }
 0x5aa   :  { %v1966_v3 = vmul.f32 -1.442695, %v1792_v63  ;;  %v1702_v26 = vmax.f32 %v1692_v21, 0.0 }
 0x5ab   :  { %2407 = vpow2.f32 %v1967_v0  ;;  %v1827_v30 = vsub.f32 %v1703_v23, %v2876_v48 }
 0x5ac   :  { %2409 = vpow2.f32 %v1966_v3  ;;  %v1826_v33 = vsub.f32 %v1702_v26, %v2873_v6 }
 0x5b1   :  { %v2404_v5 = vpop.eup %2403 }
 0x5b2   :  { %v2406_v7 = vpop.eup %2405  ;;  %v1813_v9 = vadd.f32 1.0, %v2404_v5 }
 0x5b3   :  { %v1812_v10 = vadd.f32 1.0, %v2406_v7 }
 0x5b4   :  { %2411 = vrcp.f32 %v1813_v9 }
 0x5b5   :  { %v2408_v11 = vpop.eup %2407  ;;  %2413 = vrcp.f32 %v1812_v10 }
 0x5b6   :  { %v2410_v13 = vpop.eup %2409  ;;  %v1815_v15 = vadd.f32 1.0, %v2408_v11 }
 0x5b7   :  { %v1814_v16 = vadd.f32 1.0, %v2410_v13 }
 0x5b8   :  { %2415 = vrcp.f32 %v1815_v15 }
 0x5b9   :  { %2417 = vrcp.f32 %v1814_v16 }
 0x5be   :  { %v2412_v24 = vpop.eup %2411 }
 0x5bf   :  { %v2414_v27 = vpop.eup %2413  ;;  %v1829_v28 = vmul.f32 %v2412_v24, %v1825_v22 }
 0x5c0   :  { %v1828_v29 = vmul.f32 %v2414_v27, %v1824_v25 }
 0x5c1   :  { %v1833_v31 = vadd.f32 %v1829_v28, %v1589_v20 }
 0x5c2   :  { %v2416_v32 = vpop.eup %2415  ;;  %v1832_v34 = vadd.f32 %v1828_v29, %v2863_v1 }
 0x5c3   :  { %v2418_v35 = vpop.eup %2417  ;;  %v1831_v36 = vmul.f32 %v2416_v32, %v1827_v30  ;;  %1837 = vst.msk [vmem:[#allocation4 + $0x8] sm:$0xff] %vm1360_vm5, %v1833_v31 }
 0x5c4   :  { %v1830_v37 = vmul.f32 %v2418_v35, %v1826_v33  ;;  %1836 = vst.msk [vmem:[#allocation4] sm:$0xff] %vm1360_vm5, %v1832_v34 }
 0x5c5   :  { %v1835_v38 = vadd.f32 %v1831_v36, %v2876_v48 }
 0x5c6   :  { %v1834_v39 = vadd.f32 %v1830_v37, %v2873_v6 }
 0x5c7   :  { %1839 = vst.msk [vmem:[#allocation4 + $0x18] sm:$0xff] %vm1360_vm5, %v1835_v38 }
 0x5c8   :  { %1838 = vst.msk [vmem:[#allocation4 + $0x10] sm:$0xff] %vm1360_vm5, %v1834_v39 }
 0x5c9   :  { %2430 = shalt.err (!%p2427_p4)
}
 0x5ca   :  { %s2431_s9 = scalar_lea.hbm %s2930_s16, 512 }
 0x5cb   :  { %p2432_p5 = scmp.ne.s32.totalorder %s2930_s16, %s2431_s9  ;;  %p2435_p6 = scmp.lt.u32.totalorder %s2431_s9, %s2930_s16 }
 0x5cd   :  { %p2437_p7 = pnand %p2435_p6, %p2432_p5 }
 0x5cf   :  { %2440 = shalt.err (!%p2437_p7)
}
 0x5d0   :  { %s2445_s29 = smov 128   ;;  %s2446_s5 = smov 8  }
 0x5d1   :  { %1851 = dma.vmem_to_hbm [thread:$0]  %s1846_s2, 512, %s2930_s16, [#allocation5], %s2445_s29, %s2445_s29, %s2446_s5  }
 0x5d2   :  { %2441 = dma.done.wait [#allocation5], 512  }
 0x5d3   :  { %2442 = vsyncadd [#allocation5], 4294966784 }
 0x5d4   :  { %1855 = vsyncpa [#allocation5], 1 }

</bundles_post_ra>
